<compile_context>
chip_gen: v7x
topology: tpu7x:2x2x1
jax: 0.10.0
libtpu: 0.0.40
codegen_flags: <defaults>
</compile_context>

<pallas_src>
import math
import functools

import jax
import jax.numpy as jnp
from jax.experimental import pallas as pl
from jax.experimental.pallas import tpu as pltpu


# ----------------------------- small helpers ------------------------------

_INV_SQRT2 = 1.0 / math.sqrt(2.0)


def _gelu_exact(x):
    # BERT's exact-erf GELU: x * 0.5 * (1 + erf(x / sqrt(2)))
    return x * 0.5 * (1.0 + jax.lax.erf(x * _INV_SQRT2))


def _layer_norm(x, gamma, beta, eps):
    # TF-style LayerNorm (epsilon inside the sqrt), computed in f32.
    u = jnp.mean(x, axis=-1, keepdims=True)
    d = x - u
    s = jnp.mean(d * d, axis=-1, keepdims=True)
    return d / jnp.sqrt(s + eps) * gamma + beta


def _pick_token_tile(m, preferred=256):
    """Largest power-of-two tile <= preferred that divides M (min 8);
    falls back to the full M (full-dim blocks are always legal)."""
    t = preferred
    while t >= 8:
        if m % t == 0:
            return t
        t //= 2
    return m


# ------------------------------ kernels -----------------------------------


def _dense_kernel(x_ref, w_ref, b_ref, o_ref):
    # y = x @ W + b     (W pre-transposed to [in, out]); f32 accumulation.
    acc = jnp.dot(x_ref[...], w_ref[...], preferred_element_type=jnp.float32)
    acc = acc + b_ref[...].astype(jnp.float32)
    o_ref[...] = acc.astype(o_ref.dtype)


def _dense_residual_ln_kernel(x_ref, res_ref, w_ref, b_ref, g_ref, bt_ref,
                              o_ref, *, eps):
    # y = LayerNorm(x @ W + b + residual)
    acc = jnp.dot(x_ref[...], w_ref[...], preferred_element_type=jnp.float32)
    acc = acc + b_ref[...].astype(jnp.float32) + res_ref[...].astype(jnp.float32)
    y = _layer_norm(acc, g_ref[...].astype(jnp.float32),
                    bt_ref[...].astype(jnp.float32), eps)
    o_ref[...] = y.astype(o_ref.dtype)


def _ffn_kernel(x_ref, w1_ref, b1_ref, w2_ref, b2_ref, g_ref, bt_ref,
                o_ref, *, eps):
    # Fused BertIntermediate + BertOutput:
    #   h = gelu(x @ W1 + b1); y = LayerNorm(h @ W2 + b2 + x)
    # The (tm, I) intermediate stays in VMEM/vregs - never written to HBM.
    x = x_ref[...]
    h = jnp.dot(x, w1_ref[...], preferred_element_type=jnp.float32)
    h = _gelu_exact(h + b1_ref[...].astype(jnp.float32))
    y = jnp.dot(h.astype(w2_ref.dtype), w2_ref[...],
                preferred_element_type=jnp.float32)
    y = y + b2_ref[...].astype(jnp.float32) + x.astype(jnp.float32)
    y = _layer_norm(y, g_ref[...].astype(jnp.float32),
                    bt_ref[...].astype(jnp.float32), eps)
    o_ref[...] = y.astype(o_ref.dtype)


def _attention_kernel(mask_ref, q_ref, k_ref, v_ref, o_ref, *, scale):
    # One (batch, head) per grid step; whole sequence resident in VMEM.
    q = q_ref[0, 0]                       # (S, Dh)
    k = k_ref[0, 0]                       # (S, Dh)
    v = v_ref[0, 0]                       # (S, Dh)
    s = jnp.dot(q, k.T, preferred_element_type=jnp.float32) * scale
    s = s + mask_ref[0].astype(jnp.float32)        # (1, S) mask over key positions
    s = s - jnp.max(s, axis=-1, keepdims=True)
    p = jnp.exp(s)
    p = p / jnp.sum(p, axis=-1, keepdims=True)
    ctx = jnp.dot(p.astype(v.dtype), v, preferred_element_type=jnp.float32)
    o_ref[0, 0] = ctx.astype(o_ref.dtype)


# --------------------------- pallas_call wrappers --------------------------


def _dense(x2d, w, b, *, tm):
    M, H = x2d.shape
    N = w.shape[1]
    return pl.pallas_call(
        _dense_kernel,
        out_shape=jax.ShapeDtypeStruct((M, N), x2d.dtype),
        grid_spec=pltpu.PrefetchScalarGridSpec(
            num_scalar_prefetch=0,
            grid=(M // tm,),
            in_specs=[
                pl.BlockSpec((tm, H), lambda i: (i, 0)),
                pl.BlockSpec((H, N), lambda i: (0, 0)),   # weight resident
                pl.BlockSpec((1, N), lambda i: (0, 0)),
            ],
            out_specs=pl.BlockSpec((tm, N), lambda i: (i, 0)),
        ),
        compiler_params=pltpu.CompilerParams(dimension_semantics=("parallel",)),
    )(x2d, w, b)


def _dense_residual_ln(x2d, res2d, w, b, gamma, beta, *, eps, tm):
    M, H = x2d.shape
    N = w.shape[1]
    return pl.pallas_call(
        functools.partial(_dense_residual_ln_kernel, eps=eps),
        out_shape=jax.ShapeDtypeStruct((M, N), x2d.dtype),
        grid_spec=pltpu.PrefetchScalarGridSpec(
            num_scalar_prefetch=0,
            grid=(M // tm,),
            in_specs=[
                pl.BlockSpec((tm, H), lambda i: (i, 0)),
                pl.BlockSpec((tm, N), lambda i: (i, 0)),
                pl.BlockSpec((H, N), lambda i: (0, 0)),
                pl.BlockSpec((1, N), lambda i: (0, 0)),
                pl.BlockSpec((1, N), lambda i: (0, 0)),
                pl.BlockSpec((1, N), lambda i: (0, 0)),
            ],
            out_specs=pl.BlockSpec((tm, N), lambda i: (i, 0)),
        ),
        compiler_params=pltpu.CompilerParams(dimension_semantics=("parallel",)),
    )(x2d, res2d, w, b, gamma, beta)


def _ffn(x2d, w1, b1, w2, b2, gamma, beta, *, eps, tm):
    # TODO(synk): for BERT-large scale I (>= 4096) tile the intermediate dim
    # (grid over I, weight axis outermost) so the (H, tn) weight slab fits
    # v7x's 64 MiB VMEM instead of keeping the full W1/W2 resident.
    M, H = x2d.shape
    I = w1.shape[1]
    nbytes = x2d.dtype.itemsize
    cost = pl.CostEstimate(
        flops=4 * M * H * I,                    # two matmuls
        transcendentals=M * I,                  # erf per intermediate element
        bytes_accessed=nbytes * (2 * M * H + 2 * H * I + I + 3 * H),
    )
    return pl.pallas_call(
        functools.partial(_ffn_kernel, eps=eps),
        out_shape=jax.ShapeDtypeStruct((M, H), x2d.dtype),
        grid_spec=pltpu.PrefetchScalarGridSpec(
            num_scalar_prefetch=0,
            grid=(M // tm,),
            in_specs=[
                pl.BlockSpec((tm, H), lambda i: (i, 0)),
                pl.BlockSpec((H, I), lambda i: (0, 0)),
                pl.BlockSpec((1, I), lambda i: (0, 0)),
                pl.BlockSpec((I, H), lambda i: (0, 0)),
                pl.BlockSpec((1, H), lambda i: (0, 0)),
                pl.BlockSpec((1, H), lambda i: (0, 0)),
                pl.BlockSpec((1, H), lambda i: (0, 0)),
            ],
            out_specs=pl.BlockSpec((tm, H), lambda i: (i, 0)),
        ),
        compiler_params=pltpu.CompilerParams(dimension_semantics=("parallel",)),
        cost_estimate=cost,
    )(x2d, w1, b1, w2, b2, gamma, beta)


def _attention(q, k, v, mask3, *, num_heads):
    B, S, H = q.shape
    Dh = H // num_heads
    scale = 1.0 / math.sqrt(Dh)

    def split_heads(t):
        return t.reshape(B, S, num_heads, Dh).transpose(0, 2, 1, 3)  # (B, nH, S, Dh)

    q4, k4, v4 = split_heads(q), split_heads(k), split_heads(v)
    blk = pl.BlockSpec((1, 1, S, Dh), lambda b, h: (b, h, 0, 0))

    out = pl.pallas_call(
        functools.partial(_attention_kernel, scale=scale),
        out_shape=jax.ShapeDtypeStruct((B, num_heads, S, Dh), q.dtype),
        grid_spec=pltpu.PrefetchScalarGridSpec(
            num_scalar_prefetch=0,
            grid=(B, num_heads),
            in_specs=[
                pl.BlockSpec((1, 1, S), lambda b, h: (b, 0, 0)),   # additive mask
                blk, blk, blk,
            ],
            out_specs=blk,
        ),
        compiler_params=pltpu.CompilerParams(
            dimension_semantics=("parallel", "parallel")),
    )(mask3, q4, k4, v4)

    return out.transpose(0, 2, 1, 3).reshape(B, S, H)


# ------------------------------ model forward ------------------------------


def bert_layer_forward(hidden, mask3, p, *, num_heads, eps):
    B, S, H = hidden.shape
    M = B * S
    tm = _pick_token_tile(M)
    x2d = hidden.reshape(M, H)

    # 1) fused QKV projection
    qkv = _dense(x2d, p["wqkv"], p["bqkv"], tm=tm)          # (M, 3H)
    q = qkv[:, :H].reshape(B, S, H)
    k = qkv[:, H:2 * H].reshape(B, S, H)
    v = qkv[:, 2 * H:].reshape(B, S, H)

    # 2) multi-head self-attention
    ctx = _attention(q, k, v, mask3, num_heads=num_heads)   # (B, S, H)

    # 3) attention output projection + residual + LayerNorm
    attn_out = _dense_residual_ln(ctx.reshape(M, H), x2d,
                                  p["wo"], p["bo"], p["ln1_g"], p["ln1_b"],
                                  eps=eps, tm=tm)

    # 4) fused FFN (intermediate dense + GELU + output dense) + residual + LN
    out = _ffn(attn_out, p["w1"], p["b1"], p["w2"], p["b2"],
               p["ln2_g"], p["ln2_b"], eps=eps, tm=tm)
    return out.reshape(B, S, H)


def bert_encoder_forward(hidden_states, attention_mask, layer_params, *,
                         num_heads, eps=1e-12):
    """hidden_states: [B, S, H]; attention_mask: BERT extended additive mask
    of shape [B, 1, 1, S] (or anything reshapeable to [B, 1, S])."""
    # TODO(synk): dropout (eval no-op), head_mask pruning and the
    # output_attentions / output_hidden_states tuple plumbing are omitted.
    B, S, _ = hidden_states.shape
    mask3 = attention_mask.reshape(B, 1, S).astype(jnp.float32)
    h = hidden_states
    for p in layer_params:
        h = bert_layer_forward(h, mask3, p, num_heads=num_heads, eps=eps)
    return h


# --------------------- parameters (PyTorch layout + prep) ------------------


def make_torch_params(key, num_layers, hidden, intermediate):
    """nn.Linear layout: weight [out, in], bias [out]."""
    params = []
    for _ in range(num_layers):
        key, *ks = jax.random.split(key, 17)
        rn = lambda k, shape, s=0.05: jax.random.normal(k, shape, jnp.float32) * s
        params.append(dict(
            wq=rn(ks[0], (hidden, hidden)),        bq=rn(ks[1], (hidden,)),
            wk=rn(ks[2], (hidden, hidden)),        bk=rn(ks[3], (hidden,)),
            wv=rn(ks[4], (hidden, hidden)),        bv=rn(ks[5], (hidden,)),
            wo=rn(ks[6], (hidden, hidden)),        bo=rn(ks[7], (hidden,)),
            ln1_g=1.0 + rn(ks[8], (hidden,)),      ln1_b=rn(ks[9], (hidden,)),
            w1=rn(ks[10], (intermediate, hidden)), b1=rn(ks[11], (intermediate,)),
            w2=rn(ks[12], (hidden, intermediate)), b2=rn(ks[13], (hidden,)),
            ln2_g=1.0 + rn(ks[14], (hidden,)),     ln2_b=rn(ks[15], (hidden,)),
        ))
    return params


def prepare_kernel_params(tp):
    """One-time layout prep (outside the jitted forward): transpose weights to
    [in, out], concatenate Q/K/V, reshape biases/LN params to [1, N]."""
    H = tp["wq"].shape[0]
    I = tp["w1"].shape[0]
    return dict(
        wqkv=jnp.concatenate([tp["wq"].T, tp["wk"].T, tp["wv"].T], axis=1),
        bqkv=jnp.concatenate([tp["bq"], tp["bk"], tp["bv"]]).reshape(1, 3 * H),
        wo=tp["wo"].T,            bo=tp["bo"].reshape(1, H),
        ln1_g=tp["ln1_g"].reshape(1, H), ln1_b=tp["ln1_b"].reshape(1, H),
        w1=tp["w1"].T,            b1=tp["b1"].reshape(1, I),
        w2=tp["w2"].T,            b2=tp["b2"].reshape(1, H),
        ln2_g=tp["ln2_g"].reshape(1, H), ln2_b=tp["ln2_b"].reshape(1, H),
    )


# ------------------------------ pure-JAX reference -------------------------


def _ref_ln(x, g, b, eps):
    u = x.mean(-1, keepdims=True)
    s = ((x - u) ** 2).mean(-1, keepdims=True)
    return (x - u) / jnp.sqrt(s + eps) * g + b


def _ref_encoder(x, ext_mask4, torch_params, num_heads, eps):
    B, S, H = x.shape
    Dh = H // num_heads
    h = x
    for p in torch_params:
        q = jnp.einsum("bsh,oh->bso", h, p["wq"]) + p["bq"]
        k = jnp.einsum("bsh,oh->bso", h, p["wk"]) + p["bk"]
        v = jnp.einsum("bsh,oh->bso", h, p["wv"]) + p["bv"]
        split = lambda t: t.reshape(B, S, num_heads, Dh).transpose(0, 2, 1, 3)
        qh, kh, vh = split(q), split(k), split(v)
        scores = jnp.einsum("bnqd,bnkd->bnqk", qh, kh) / math.sqrt(Dh)
        scores = scores + ext_mask4
        probs = jax.nn.softmax(scores, axis=-1)
        ctx = jnp.einsum("bnqk,bnkd->bnqd", probs, vh)
        ctx = ctx.transpose(0, 2, 1, 3).reshape(B, S, H)
        attn = jnp.einsum("bsh,oh->bso", ctx, p["wo"]) + p["bo"] + h
        attn = _ref_ln(attn, p["ln1_g"], p["ln1_b"], eps)
        inter = jnp.einsum("bsh,ih->bsi", attn, p["w1"]) + p["b1"]
        inter = inter * 0.5 * (1.0 + jax.lax.erf(inter / math.sqrt(2.0)))
        out = jnp.einsum("bsi,hi->bsh", inter, p["w2"]) + p["b2"] + attn
        h = _ref_ln(out, p["ln2_g"], p["ln2_b"], eps)
    return h


# ---------------------------------- test -----------------------------------

if __name__ == "__main__":
    key = jax.random.PRNGKey(0)
    batch, seq, hidden, intermediate = 2, 8, 32, 128
    num_heads, num_layers = 4, 2
    eps = 1e-12

    key, kx, kp = jax.random.split(key, 3)
    x = jax.random.normal(kx, (batch, seq, hidden), dtype=jnp.float32)

    torch_params = make_torch_params(kp, num_layers, hidden, intermediate)
    kernel_params = [prepare_kernel_params(tp) for tp in torch_params]  # one-time

    # BERT-style extended additive attention mask (mask out last 2 keys of batch 1)
    keep = jnp.ones((batch, seq), dtype=jnp.float32)
    keep = keep.at[1, -2:].set(0.0)
    ext_mask = (1.0 - keep)[:, None, None, :] * -10000.0            # (B, 1, 1, S)

    fwd = jax.jit(functools.partial(bert_encoder_forward,
                                    num_heads=num_heads, eps=eps))
    out = fwd(x, ext_mask, kernel_params)
    out = jax.block_until_ready(out)

    ref = _ref_encoder(x, ext_mask, torch_params, num_heads, eps)
    assert out.shape == (batch, seq, hidden)
    max_err = float(jnp.max(jnp.abs(out - ref)))
    assert jnp.allclose(out, ref, atol=1e-4, rtol=1e-4), \
        f"mismatch vs reference: max abs err {max_err}"

    print("KERNEL_OK")
</pallas_src>

<mosaic_0001>
module attributes {stable_mosaic.version = 11 : i64} {
  func.func @_dense_kernel(%arg0: i32, %arg1: memref<16x32xf32, #tpu.memory_space<vmem>>, %arg2: memref<32x96xf32, #tpu.memory_space<vmem>>, %arg3: memref<1x96xf32, #tpu.memory_space<vmem>>, %arg4: memref<16x96xf32, #tpu.memory_space<vmem>>) attributes {dimension_semantics = [#tpu.dimension_semantics<parallel>], iteration_bounds = array<i64: 1>, scalar_prefetch = 0 : i64, scratch_operands = 0 : i64, tpu.core_type = #tpu.core_type<tc>, window_params = [{transform_indices = @transform_0, window_bounds = array<i64: 16, 32>}, {pipeline_mode = #tpu.pipeline_mode<synchronous>, transform_indices = @transform_1, window_bounds = array<i64: 32, 96>}, {pipeline_mode = #tpu.pipeline_mode<synchronous>, transform_indices = @transform_2, window_bounds = array<i64: 1, 96>}, {transform_indices = @transform_3, window_bounds = array<i64: 16, 96>}]} {
    %c0 = arith.constant 0 : index
    %c0_0 = arith.constant 0 : index
    %0 = vector.load %arg1[%c0, %c0_0] : memref<16x32xf32, #tpu.memory_space<vmem>>, vector<16x32xf32>
    %c0_1 = arith.constant 0 : index
    %c0_2 = arith.constant 0 : index
    %1 = vector.load %arg2[%c0_1, %c0_2] : memref<32x96xf32, #tpu.memory_space<vmem>>, vector<32x96xf32>
    %cst = arith.constant dense<0.000000e+00> : vector<16x96xf32>
    %2 = tpu.matmul %0, %1, %cst {dimension_numbers = #tpu.dot_dimension_numbers<[1], [0], [0], [1], [0, 0, 1, 1], [], []>} : vector<16x32xf32>, vector<32x96xf32>, vector<16x96xf32> -> vector<16x96xf32>
    %c0_3 = arith.constant 0 : index
    %c0_4 = arith.constant 0 : index
    %3 = vector.load %arg3[%c0_3, %c0_4] : memref<1x96xf32, #tpu.memory_space<vmem>>, vector<1x96xf32>
    %4 = vector.broadcast %3 : vector<1x96xf32> to vector<16x96xf32>
    %5 = arith.addf %2, %4 : vector<16x96xf32>
    %c0_5 = arith.constant 0 : index
    %c0_6 = arith.constant 0 : index
    %6 = vector.load %arg4[%c0_5, %c0_6] : memref<16x96xf32, #tpu.memory_space<vmem>>, vector<16x96xf32>
    tpu.vector_store %arg4[%c0_5, %c0_6], %5 {strides = array<i32>} : memref<16x96xf32, #tpu.memory_space<vmem>>, vector<16x96xf32>,
    return
  }
  func.func @transform_0(%arg0: i32) -> (i32, i32) {
    %c0_i32 = arith.constant 0 : i32
    %c0_i32_0 = arith.constant 0 : i32
    return %arg0, %c0_i32 : i32, i32
  }
  func.func @transform_1(%arg0: i32) -> (i32, i32) {
    %c0_i32 = arith.constant 0 : i32
    %c0_i32_0 = arith.constant 0 : i32
    %c0_i32_1 = arith.constant 0 : i32
    return %c0_i32, %c0_i32_0 : i32, i32
  }
  func.func @transform_2(%arg0: i32) -> (i32, i32) {
    %c0_i32 = arith.constant 0 : i32
    %c0_i32_0 = arith.constant 0 : i32
    %c0_i32_1 = arith.constant 0 : i32
    return %c0_i32, %c0_i32_0 : i32, i32
  }
  func.func @transform_3(%arg0: i32) -> (i32, i32) {
    %c0_i32 = arith.constant 0 : i32
    %c0_i32_0 = arith.constant 0 : i32
    return %arg0, %c0_i32 : i32, i32
  }
}

module attributes {stable_mosaic.version = 11 : i64} {
  func.func @_ffn_kernel(%arg0: i32, %arg1: memref<16x32xf32, #tpu.memory_space<vmem>>, %arg2: memref<32x128xf32, #tpu.memory_space<vmem>>, %arg3: memref<1x128xf32, #tpu.memory_space<vmem>>, %arg4: memref<128x32xf32, #tpu.memory_space<vmem>>, %arg5: memref<1x32xf32, #tpu.memory_space<vmem>>, %arg6: memref<1x32xf32, #tpu.memory_space<vmem>>, %arg7: memref<1x32xf32, #tpu.memory_space<vmem>>, %arg8: memref<16x32xf32, #tpu.memory_space<vmem>>) attributes {dimension_semantics = [#tpu.dimension_semantics<parallel>], iteration_bounds = array<i64: 1>, scalar_prefetch = 0 : i64, scratch_operands = 0 : i64, tpu.core_type = #tpu.core_type<tc>, window_params = [{transform_indices = @transform_0, window_bounds = array<i64: 16, 32>}, {pipeline_mode = #tpu.pipeline_mode<synchronous>, transform_indices = @transform_1, window_bounds = array<i64: 32, 128>}, {pipeline_mode = #tpu.pipeline_mode<synchronous>, transform_indices = @transform_2, window_bounds = array<i64: 1, 128>}, {pipeline_mode = #tpu.pipeline_mode<synchronous>, transform_indices = @transform_3, window_bounds = array<i64: 128, 32>}, {pipeline_mode = #tpu.pipeline_mode<synchronous>, transform_indices = @transform_4, window_bounds = array<i64: 1, 32>}, {pipeline_mode = #tpu.pipeline_mode<synchronous>, transform_indices = @transform_5, window_bounds = array<i64: 1, 32>}, {pipeline_mode = #tpu.pipeline_mode<synchronous>, transform_indices = @transform_6, window_bounds = array<i64: 1, 32>}, {transform_indices = @transform_7, window_bounds = array<i64: 16, 32>}]} {
    %c0 = arith.constant 0 : index
    %c0_0 = arith.constant 0 : index
    %0 = vector.load %arg1[%c0, %c0_0] : memref<16x32xf32, #tpu.memory_space<vmem>>, vector<16x32xf32>
    %c0_1 = arith.constant 0 : index
    %c0_2 = arith.constant 0 : index
    %1 = vector.load %arg2[%c0_1, %c0_2] : memref<32x128xf32, #tpu.memory_space<vmem>>, vector<32x128xf32>
    %cst = arith.constant dense<0.000000e+00> : vector<16x128xf32>
    %2 = tpu.matmul %0, %1, %cst {dimension_numbers = #tpu.dot_dimension_numbers<[1], [0], [0], [1], [0, 0, 1, 1], [], []>} : vector<16x32xf32>, vector<32x128xf32>, vector<16x128xf32> -> vector<16x128xf32>
    %c0_3 = arith.constant 0 : index
    %c0_4 = arith.constant 0 : index
    %3 = vector.load %arg3[%c0_3, %c0_4] : memref<1x128xf32, #tpu.memory_space<vmem>>, vector<1x128xf32>
    %4 = vector.broadcast %3 : vector<1x128xf32> to vector<16x128xf32>
    %5 = arith.addf %2, %4 : vector<16x128xf32>
    %cst_5 = arith.constant 5.000000e-01 : f32
    %6 = vector.broadcast %cst_5 : f32 to vector<16x128xf32>
    %7 = arith.mulf %5, %6 : vector<16x128xf32>
    %cst_6 = arith.constant 0.707106769 : f32
    %8 = vector.broadcast %cst_6 : f32 to vector<16x128xf32>
    %9 = arith.mulf %5, %8 : vector<16x128xf32>
    %10 = math.erf %9 : vector<16x128xf32>
    %cst_7 = arith.constant 1.000000e+00 : f32
    %11 = vector.broadcast %cst_7 : f32 to vector<16x128xf32>
    %12 = arith.addf %11, %10 : vector<16x128xf32>
    %13 = arith.mulf %7, %12 : vector<16x128xf32>
    %c0_8 = arith.constant 0 : index
    %c0_9 = arith.constant 0 : index
    %14 = vector.load %arg4[%c0_8, %c0_9] : memref<128x32xf32, #tpu.memory_space<vmem>>, vector<128x32xf32>
    %cst_10 = arith.constant dense<0.000000e+00> : vector<16x32xf32>
    %15 = tpu.matmul %13, %14, %cst_10 {dimension_numbers = #tpu.dot_dimension_numbers<[1], [0], [0], [1], [0, 0, 1, 1], [], []>} : vector<16x128xf32>, vector<128x32xf32>, vector<16x32xf32> -> vector<16x32xf32>
    %c0_11 = arith.constant 0 : index
    %c0_12 = arith.constant 0 : index
    %16 = vector.load %arg5[%c0_11, %c0_12] : memref<1x32xf32, #tpu.memory_space<vmem>>, vector<1x32xf32>
    %17 = vector.broadcast %16 : vector<1x32xf32> to vector<16x32xf32>
    %18 = arith.addf %15, %17 : vector<16x32xf32>
    %19 = arith.addf %18, %0 : vector<16x32xf32>
    %c0_13 = arith.constant 0 : index
    %c0_14 = arith.constant 0 : index
    %20 = vector.load %arg6[%c0_13, %c0_14] : memref<1x32xf32, #tpu.memory_space<vmem>>, vector<1x32xf32>
    %c0_15 = arith.constant 0 : index
    %c0_16 = arith.constant 0 : index
    %21 = vector.load %arg7[%c0_15, %c0_16] : memref<1x32xf32, #tpu.memory_space<vmem>>, vector<1x32xf32>
    %cst_17 = arith.constant dense<0.000000e+00> : vector<16xf32>
    %22 = vector.multi_reduction <add>, %19, %cst_17 [1] : vector<16x32xf32> to vector<16xf32>
    %23 = vector.shape_cast %22 : vector<16xf32> to vector<16x1xf32>
    %cst_18 = arith.constant 3.200000e+01 : f32
    %24 = vector.broadcast %cst_18 : f32 to vector<16x1xf32>
    %25 = arith.divf %23, %24 : vector<16x1xf32>
    %26 = vector.broadcast %25 : vector<16x1xf32> to vector<16x32xf32>
    %27 = arith.subf %19, %26 : vector<16x32xf32>
    %28 = arith.mulf %27, %27 : vector<16x32xf32>
    %cst_19 = arith.constant dense<0.000000e+00> : vector<16xf32>
    %29 = vector.multi_reduction <add>, %28, %cst_19 [1] : vector<16x32xf32> to vector<16xf32>
    %30 = vector.shape_cast %29 : vector<16xf32> to vector<16x1xf32>
    %cst_20 = arith.constant 3.200000e+01 : f32
    %31 = vector.broadcast %cst_20 : f32 to vector<16x1xf32>
    %32 = arith.divf %30, %31 : vector<16x1xf32>
    %cst_21 = arith.constant 9.99999996E-13 : f32
    %33 = vector.broadcast %cst_21 : f32 to vector<16x1xf32>
    %34 = arith.addf %32, %33 : vector<16x1xf32>
    %35 = math.sqrt %34 : vector<16x1xf32>
    %36 = vector.broadcast %35 : vector<16x1xf32> to vector<16x32xf32>
    %37 = arith.divf %27, %36 : vector<16x32xf32>
    %38 = vector.broadcast %20 : vector<1x32xf32> to vector<16x32xf32>
    %39 = arith.mulf %37, %38 : vector<16x32xf32>
    %40 = vector.broadcast %21 : vector<1x32xf32> to vector<16x32xf32>
    %41 = arith.addf %39, %40 : vector<16x32xf32>
    %c0_22 = arith.constant 0 : index
    %c0_23 = arith.constant 0 : index
    %42 = vector.load %arg8[%c0_22, %c0_23] : memref<16x32xf32, #tpu.memory_space<vmem>>, vector<16x32xf32>
    tpu.vector_store %arg8[%c0_22, %c0_23], %41 {strides = array<i32>} : memref<16x32xf32, #tpu.memory_space<vmem>>, vector<16x32xf32>,
    return
  }
  func.func @transform_0(%arg0: i32) -> (i32, i32) {
    %c0_i32 = arith.constant 0 : i32
    %c0_i32_0 = arith.constant 0 : i32
    return %arg0, %c0_i32 : i32, i32
  }
  func.func @transform_1(%arg0: i32) -> (i32, i32) {
    %c0_i32 = arith.constant 0 : i32
    %c0_i32_0 = arith.constant 0 : i32
    %c0_i32_1 = arith.constant 0 : i32
    return %c0_i32, %c0_i32_0 : i32, i32
  }
  func.func @transform_2(%arg0: i32) -> (i32, i32) {
    %c0_i32 = arith.constant 0 : i32
    %c0_i32_0 = arith.constant 0 : i32
    %c0_i32_1 = arith.constant 0 : i32
    return %c0_i32, %c0_i32_0 : i32, i32
  }
  func.func @transform_3(%arg0: i32) -> (i32, i32) {
    %c0_i32 = arith.constant 0 : i32
    %c0_i32_0 = arith.constant 0 : i32
    %c0_i32_1 = arith.constant 0 : i32
    return %c0_i32, %c0_i32_0 : i32, i32
  }
  func.func @transform_4(%arg0: i32) -> (i32, i32) {
    %c0_i32 = arith.constant 0 : i32
    %c0_i32_0 = arith.constant 0 : i32
    %c0_i32_1 = arith.constant 0 : i32
    return %c0_i32, %c0_i32_0 : i32, i32
  }
  func.func @transform_5(%arg0: i32) -> (i32, i32) {
    %c0_i32 = arith.constant 0 : i32
    %c0_i32_0 = arith.constant 0 : i32
    %c0_i32_1 = arith.constant 0 : i32
    return %c0_i32, %c0_i32_0 : i32, i32
  }
  func.func @transform_6(%arg0: i32) -> (i32, i32) {
    %c0_i32 = arith.constant 0 : i32
    %c0_i32_0 = arith.constant 0 : i32
    %c0_i32_1 = arith.constant 0 : i32
    return %c0_i32, %c0_i32_0 : i32, i32
  }
  func.func @transform_7(%arg0: i32) -> (i32, i32) {
    %c0_i32 = arith.constant 0 : i32
    %c0_i32_0 = arith.constant 0 : i32
    return %arg0, %c0_i32 : i32, i32
  }
}

module attributes {stable_mosaic.version = 11 : i64} {
  func.func @_attention_kernel(%arg0: i32, %arg1: i32, %arg2: memref<1x1x8xf32, #tpu.memory_space<vmem>>, %arg3: memref<1x1x8x8xf32, #tpu.memory_space<vmem>>, %arg4: memref<1x1x8x8xf32, #tpu.memory_space<vmem>>, %arg5: memref<1x1x8x8xf32, #tpu.memory_space<vmem>>, %arg6: memref<1x1x8x8xf32, #tpu.memory_space<vmem>>) attributes {dimension_semantics = [#tpu.dimension_semantics<parallel>, #tpu.dimension_semantics<parallel>], iteration_bounds = array<i64: 2, 4>, scalar_prefetch = 0 : i64, scratch_operands = 0 : i64, tpu.core_type = #tpu.core_type<tc>, window_params = [{transform_indices = @transform_0, window_bounds = array<i64: 1, 1, 8>}, {transform_indices = @transform_1, window_bounds = array<i64: 1, 1, 8, 8>}, {transform_indices = @transform_2, window_bounds = array<i64: 1, 1, 8, 8>}, {transform_indices = @transform_3, window_bounds = array<i64: 1, 1, 8, 8>}, {transform_indices = @transform_4, window_bounds = array<i64: 1, 1, 8, 8>}]} {
    %c0 = arith.constant 0 : index
    %c0_0 = arith.constant 0 : index
    %c0_1 = arith.constant 0 : index
    %c0_2 = arith.constant 0 : index
    %0 = vector.load %arg3[%c0, %c0_0, %c0_1, %c0_2] : memref<1x1x8x8xf32, #tpu.memory_space<vmem>>, vector<1x1x8x8xf32>
    %1 = vector.shape_cast %0 : vector<1x1x8x8xf32> to vector<8x8xf32>
    %c0_3 = arith.constant 0 : index
    %c0_4 = arith.constant 0 : index
    %c0_5 = arith.constant 0 : index
    %c0_6 = arith.constant 0 : index
    %2 = vector.load %arg4[%c0_3, %c0_4, %c0_5, %c0_6] : memref<1x1x8x8xf32, #tpu.memory_space<vmem>>, vector<1x1x8x8xf32>
    %3 = vector.shape_cast %2 : vector<1x1x8x8xf32> to vector<8x8xf32>
    %c0_7 = arith.constant 0 : index
    %c0_8 = arith.constant 0 : index
    %c0_9 = arith.constant 0 : index
    %c0_10 = arith.constant 0 : index
    %4 = vector.load %arg5[%c0_7, %c0_8, %c0_9, %c0_10] : memref<1x1x8x8xf32, #tpu.memory_space<vmem>>, vector<1x1x8x8xf32>
    %5 = vector.shape_cast %4 : vector<1x1x8x8xf32> to vector<8x8xf32>
    %6 = tpu.transpose %3, [1, 0] : vector<8x8xf32> -> vector<8x8xf32>
    %cst = arith.constant dense<0.000000e+00> : vector<8x8xf32>
    %7 = tpu.matmul %1, %6, %cst {dimension_numbers = #tpu.dot_dimension_numbers<[1], [0], [0], [1], [0, 0, 1, 1], [], []>} : vector<8x8xf32>, vector<8x8xf32>, vector<8x8xf32> -> vector<8x8xf32>
    %cst_11 = arith.constant 0.353553385 : f32
    %8 = vector.broadcast %cst_11 : f32 to vector<8x8xf32>
    %9 = arith.mulf %7, %8 : vector<8x8xf32>
    %c0_12 = arith.constant 0 : index
    %c0_13 = arith.constant 0 : index
    %c0_14 = arith.constant 0 : index
    %10 = vector.load %arg2[%c0_12, %c0_13, %c0_14] : memref<1x1x8xf32, #tpu.memory_space<vmem>>, vector<1x1x8xf32>
    %11 = vector.shape_cast %10 : vector<1x1x8xf32> to vector<1x8xf32>
    %12 = vector.broadcast %11 : vector<1x8xf32> to vector<8x8xf32>
    %13 = arith.addf %9, %12 : vector<8x8xf32>
    %cst_15 = arith.constant dense<0xFF800000> : vector<8xf32>
    %14 = vector.multi_reduction <maximumf>, %13, %cst_15 [1] : vector<8x8xf32> to vector<8xf32>
    %15 = vector.shape_cast %14 : vector<8xf32> to vector<8x1xf32>
    %16 = vector.broadcast %15 : vector<8x1xf32> to vector<8x8xf32>
    %17 = arith.subf %13, %16 : vector<8x8xf32>
    %18 = math.exp %17 : vector<8x8xf32>
    %cst_16 = arith.constant dense<0.000000e+00> : vector<8xf32>
    %19 = vector.multi_reduction <add>, %18, %cst_16 [1] : vector<8x8xf32> to vector<8xf32>
    %20 = vector.shape_cast %19 : vector<8xf32> to vector<8x1xf32>
    %21 = vector.broadcast %20 : vector<8x1xf32> to vector<8x8xf32>
    %22 = arith.divf %18, %21 : vector<8x8xf32>
    %cst_17 = arith.constant dense<0.000000e+00> : vector<8x8xf32>
    %23 = tpu.matmul %22, %5, %cst_17 {dimension_numbers = #tpu.dot_dimension_numbers<[1], [0], [0], [1], [0, 0, 1, 1], [], []>} : vector<8x8xf32>, vector<8x8xf32>, vector<8x8xf32> -> vector<8x8xf32>
    %c0_18 = arith.constant 0 : index
    %c0_19 = arith.constant 0 : index
    %c0_20 = arith.constant 0 : index
    %c0_21 = arith.constant 0 : index
    %24 = vector.load %arg6[%c0_18, %c0_19, %c0_20, %c0_21] : memref<1x1x8x8xf32, #tpu.memory_space<vmem>>, vector<1x1x8x8xf32>
    %25 = vector.shape_cast %24 : vector<1x1x8x8xf32> to vector<8x8xf32>
    %26 = vector.shape_cast %23 : vector<8x8xf32> to vector<1x1x8x8xf32>
    tpu.vector_store %arg6[%c0_18, %c0_19, %c0_20, %c0_21], %26 {strides = array<i32>} : memref<1x1x8x8xf32, #tpu.memory_space<vmem>>, vector<1x1x8x8xf32>,
    return
  }
  func.func @transform_0(%arg0: i32, %arg1: i32) -> (i32, i32, i32) {
    %c0_i32 = arith.constant 0 : i32
    %c0_i32_0 = arith.constant 0 : i32
    %c0_i32_1 = arith.constant 0 : i32
    return %arg0, %c0_i32, %c0_i32_0 : i32, i32, i32
  }
  func.func @transform_1(%arg0: i32, %arg1: i32) -> (i32, i32, i32, i32) {
    %c0_i32 = arith.constant 0 : i32
    %c0_i32_0 = arith.constant 0 : i32
    %c0_i32_1 = arith.constant 0 : i32
    return %arg0, %arg1, %c0_i32, %c0_i32_0 : i32, i32, i32, i32
  }
  func.func @transform_2(%arg0: i32, %arg1: i32) -> (i32, i32, i32, i32) {
    %c0_i32 = arith.constant 0 : i32
    %c0_i32_0 = arith.constant 0 : i32
    %c0_i32_1 = arith.constant 0 : i32
    return %arg0, %arg1, %c0_i32, %c0_i32_0 : i32, i32, i32, i32
  }
  func.func @transform_3(%arg0: i32, %arg1: i32) -> (i32, i32, i32, i32) {
    %c0_i32 = arith.constant 0 : i32
    %c0_i32_0 = arith.constant 0 : i32
    %c0_i32_1 = arith.constant 0 : i32
    return %arg0, %arg1, %c0_i32, %c0_i32_0 : i32, i32, i32, i32
  }
  func.func @transform_4(%arg0: i32, %arg1: i32) -> (i32, i32, i32, i32) {
    %c0_i32 = arith.constant 0 : i32
    %c0_i32_0 = arith.constant 0 : i32
    %c0_i32_1 = arith.constant 0 : i32
    return %arg0, %arg1, %c0_i32, %c0_i32_0 : i32, i32, i32, i32
  }
}

module attributes {stable_mosaic.version = 11 : i64} {
  func.func @_dense_residual_ln_kernel(%arg0: i32, %arg1: memref<16x32xf32, #tpu.memory_space<vmem>>, %arg2: memref<16x32xf32, #tpu.memory_space<vmem>>, %arg3: memref<32x32xf32, #tpu.memory_space<vmem>>, %arg4: memref<1x32xf32, #tpu.memory_space<vmem>>, %arg5: memref<1x32xf32, #tpu.memory_space<vmem>>, %arg6: memref<1x32xf32, #tpu.memory_space<vmem>>, %arg7: memref<16x32xf32, #tpu.memory_space<vmem>>) attributes {dimension_semantics = [#tpu.dimension_semantics<parallel>], iteration_bounds = array<i64: 1>, scalar_prefetch = 0 : i64, scratch_operands = 0 : i64, tpu.core_type = #tpu.core_type<tc>, window_params = [{transform_indices = @transform_0, window_bounds = array<i64: 16, 32>}, {transform_indices = @transform_1, window_bounds = array<i64: 16, 32>}, {pipeline_mode = #tpu.pipeline_mode<synchronous>, transform_indices = @transform_2, window_bounds = array<i64: 32, 32>}, {pipeline_mode = #tpu.pipeline_mode<synchronous>, transform_indices = @transform_3, window_bounds = array<i64: 1, 32>}, {pipeline_mode = #tpu.pipeline_mode<synchronous>, transform_indices = @transform_4, window_bounds = array<i64: 1, 32>}, {pipeline_mode = #tpu.pipeline_mode<synchronous>, transform_indices = @transform_5, window_bounds = array<i64: 1, 32>}, {transform_indices = @transform_6, window_bounds = array<i64: 16, 32>}]} {
    %c0 = arith.constant 0 : index
    %c0_0 = arith.constant 0 : index
    %0 = vector.load %arg1[%c0, %c0_0] : memref<16x32xf32, #tpu.memory_space<vmem>>, vector<16x32xf32>
    %c0_1 = arith.constant 0 : index
    %c0_2 = arith.constant 0 : index
    %1 = vector.load %arg3[%c0_1, %c0_2] : memref<32x32xf32, #tpu.memory_space<vmem>>, vector<32x32xf32>
    %cst = arith.constant dense<0.000000e+00> : vector<16x32xf32>
    %2 = tpu.matmul %0, %1, %cst {dimension_numbers = #tpu.dot_dimension_numbers<[1], [0], [0], [1], [0, 0, 1, 1], [], []>} : vector<16x32xf32>, vector<32x32xf32>, vector<16x32xf32> -> vector<16x32xf32>
    %c0_3 = arith.constant 0 : index
    %c0_4 = arith.constant 0 : index
    %3 = vector.load %arg4[%c0_3, %c0_4] : memref<1x32xf32, #tpu.memory_space<vmem>>, vector<1x32xf32>
    %4 = vector.broadcast %3 : vector<1x32xf32> to vector<16x32xf32>
    %5 = arith.addf %2, %4 : vector<16x32xf32>
    %c0_5 = arith.constant 0 : index
    %c0_6 = arith.constant 0 : index
    %6 = vector.load %arg2[%c0_5, %c0_6] : memref<16x32xf32, #tpu.memory_space<vmem>>, vector<16x32xf32>
    %7 = arith.addf %5, %6 : vector<16x32xf32>
    %c0_7 = arith.constant 0 : index
    %c0_8 = arith.constant 0 : index
    %8 = vector.load %arg5[%c0_7, %c0_8] : memref<1x32xf32, #tpu.memory_space<vmem>>, vector<1x32xf32>
    %c0_9 = arith.constant 0 : index
    %c0_10 = arith.constant 0 : index
    %9 = vector.load %arg6[%c0_9, %c0_10] : memref<1x32xf32, #tpu.memory_space<vmem>>, vector<1x32xf32>
    %cst_11 = arith.constant dense<0.000000e+00> : vector<16xf32>
    %10 = vector.multi_reduction <add>, %7, %cst_11 [1] : vector<16x32xf32> to vector<16xf32>
    %11 = vector.shape_cast %10 : vector<16xf32> to vector<16x1xf32>
    %cst_12 = arith.constant 3.200000e+01 : f32
    %12 = vector.broadcast %cst_12 : f32 to vector<16x1xf32>
    %13 = arith.divf %11, %12 : vector<16x1xf32>
    %14 = vector.broadcast %13 : vector<16x1xf32> to vector<16x32xf32>
    %15 = arith.subf %7, %14 : vector<16x32xf32>
    %16 = arith.mulf %15, %15 : vector<16x32xf32>
    %cst_13 = arith.constant dense<0.000000e+00> : vector<16xf32>
    %17 = vector.multi_reduction <add>, %16, %cst_13 [1] : vector<16x32xf32> to vector<16xf32>
    %18 = vector.shape_cast %17 : vector<16xf32> to vector<16x1xf32>
    %cst_14 = arith.constant 3.200000e+01 : f32
    %19 = vector.broadcast %cst_14 : f32 to vector<16x1xf32>
    %20 = arith.divf %18, %19 : vector<16x1xf32>
    %cst_15 = arith.constant 9.99999996E-13 : f32
    %21 = vector.broadcast %cst_15 : f32 to vector<16x1xf32>
    %22 = arith.addf %20, %21 : vector<16x1xf32>
    %23 = math.sqrt %22 : vector<16x1xf32>
    %24 = vector.broadcast %23 : vector<16x1xf32> to vector<16x32xf32>
    %25 = arith.divf %15, %24 : vector<16x32xf32>
    %26 = vector.broadcast %8 : vector<1x32xf32> to vector<16x32xf32>
    %27 = arith.mulf %25, %26 : vector<16x32xf32>
    %28 = vector.broadcast %9 : vector<1x32xf32> to vector<16x32xf32>
    %29 = arith.addf %27, %28 : vector<16x32xf32>
    %c0_16 = arith.constant 0 : index
    %c0_17 = arith.constant 0 : index
    %30 = vector.load %arg7[%c0_16, %c0_17] : memref<16x32xf32, #tpu.memory_space<vmem>>, vector<16x32xf32>
    tpu.vector_store %arg7[%c0_16, %c0_17], %29 {strides = array<i32>} : memref<16x32xf32, #tpu.memory_space<vmem>>, vector<16x32xf32>,
    return
  }
  func.func @transform_0(%arg0: i32) -> (i32, i32) {
    %c0_i32 = arith.constant 0 : i32
    %c0_i32_0 = arith.constant 0 : i32
    return %arg0, %c0_i32 : i32, i32
  }
  func.func @transform_1(%arg0: i32) -> (i32, i32) {
    %c0_i32 = arith.constant 0 : i32
    %c0_i32_0 = arith.constant 0 : i32
    return %arg0, %c0_i32 : i32, i32
  }
  func.func @transform_2(%arg0: i32) -> (i32, i32) {
    %c0_i32 = arith.constant 0 : i32
    %c0_i32_0 = arith.constant 0 : i32
    %c0_i32_1 = arith.constant 0 : i32
    return %c0_i32, %c0_i32_0 : i32, i32
  }
  func.func @transform_3(%arg0: i32) -> (i32, i32) {
    %c0_i32 = arith.constant 0 : i32
    %c0_i32_0 = arith.constant 0 : i32
    %c0_i32_1 = arith.constant 0 : i32
    return %c0_i32, %c0_i32_0 : i32, i32
  }
  func.func @transform_4(%arg0: i32) -> (i32, i32) {
    %c0_i32 = arith.constant 0 : i32
    %c0_i32_0 = arith.constant 0 : i32
    %c0_i32_1 = arith.constant 0 : i32
    return %c0_i32, %c0_i32_0 : i32, i32
  }
  func.func @transform_5(%arg0: i32) -> (i32, i32) {
    %c0_i32 = arith.constant 0 : i32
    %c0_i32_0 = arith.constant 0 : i32
    %c0_i32_1 = arith.constant 0 : i32
    return %c0_i32, %c0_i32_0 : i32, i32
  }
  func.func @transform_6(%arg0: i32) -> (i32, i32) {
    %c0_i32 = arith.constant 0 : i32
    %c0_i32_0 = arith.constant 0 : i32
    return %arg0, %c0_i32 : i32, i32
  }
}

module attributes {stable_mosaic.version = 11 : i64} {
  func.func @_dense_kernel(%arg0: i32, %arg1: memref<16x32xf32, #tpu.memory_space<vmem>>, %arg2: memref<32x96xf32, #tpu.memory_space<vmem>>, %arg3: memref<1x96xf32, #tpu.memory_space<vmem>>, %arg4: memref<16x96xf32, #tpu.memory_space<vmem>>) attributes {dimension_semantics = [#tpu.dimension_semantics<parallel>], iteration_bounds = array<i64: 1>, scalar_prefetch = 0 : i64, scratch_operands = 0 : i64, tpu.core_type = #tpu.core_type<tc>, window_params = [{transform_indices = @transform_0, window_bounds = array<i64: 16, 32>}, {pipeline_mode = #tpu.pipeline_mode<synchronous>, transform_indices = @transform_1, window_bounds = array<i64: 32, 96>}, {pipeline_mode = #tpu.pipeline_mode<synchronous>, transform_indices = @transform_2, window_bounds = array<i64: 1, 96>}, {transform_indices = @transform_3, window_bounds = array<i64: 16, 96>}]} {
    %c0 = arith.constant 0 : index
    %c0_0 = arith.constant 0 : index
    %0 = vector.load %arg1[%c0, %c0_0] : memref<16x32xf32, #tpu.memory_space<vmem>>, vector<16x32xf32>
    %c0_1 = arith.constant 0 : index
    %c0_2 = arith.constant 0 : index
    %1 = vector.load %arg2[%c0_1, %c0_2] : memref<32x96xf32, #tpu.memory_space<vmem>>, vector<32x96xf32>
    %cst = arith.constant dense<0.000000e+00> : vector<16x96xf32>
    %2 = tpu.matmul %0, %1, %cst {dimension_numbers = #tpu.dot_dimension_numbers<[1], [0], [0], [1], [0, 0, 1, 1], [], []>} : vector<16x32xf32>, vector<32x96xf32>, vector<16x96xf32> -> vector<16x96xf32>
    %c0_3 = arith.constant 0 : index
    %c0_4 = arith.constant 0 : index
    %3 = vector.load %arg3[%c0_3, %c0_4] : memref<1x96xf32, #tpu.memory_space<vmem>>, vector<1x96xf32>
    %4 = vector.broadcast %3 : vector<1x96xf32> to vector<16x96xf32>
    %5 = arith.addf %2, %4 : vector<16x96xf32>
    %c0_5 = arith.constant 0 : index
    %c0_6 = arith.constant 0 : index
    %6 = vector.load %arg4[%c0_5, %c0_6] : memref<16x96xf32, #tpu.memory_space<vmem>>, vector<16x96xf32>
    tpu.vector_store %arg4[%c0_5, %c0_6], %5 {strides = array<i32>} : memref<16x96xf32, #tpu.memory_space<vmem>>, vector<16x96xf32>,
    return
  }
  func.func @transform_0(%arg0: i32) -> (i32, i32) {
    %c0_i32 = arith.constant 0 : i32
    %c0_i32_0 = arith.constant 0 : i32
    return %arg0, %c0_i32 : i32, i32
  }
  func.func @transform_1(%arg0: i32) -> (i32, i32) {
    %c0_i32 = arith.constant 0 : i32
    %c0_i32_0 = arith.constant 0 : i32
    %c0_i32_1 = arith.constant 0 : i32
    return %c0_i32, %c0_i32_0 : i32, i32
  }
  func.func @transform_2(%arg0: i32) -> (i32, i32) {
    %c0_i32 = arith.constant 0 : i32
    %c0_i32_0 = arith.constant 0 : i32
    %c0_i32_1 = arith.constant 0 : i32
    return %c0_i32, %c0_i32_0 : i32, i32
  }
  func.func @transform_3(%arg0: i32) -> (i32, i32) {
    %c0_i32 = arith.constant 0 : i32
    %c0_i32_0 = arith.constant 0 : i32
    return %arg0, %c0_i32 : i32, i32
  }
}

module attributes {stable_mosaic.version = 11 : i64} {
  func.func @_ffn_kernel(%arg0: i32, %arg1: memref<16x32xf32, #tpu.memory_space<vmem>>, %arg2: memref<32x128xf32, #tpu.memory_space<vmem>>, %arg3: memref<1x128xf32, #tpu.memory_space<vmem>>, %arg4: memref<128x32xf32, #tpu.memory_space<vmem>>, %arg5: memref<1x32xf32, #tpu.memory_space<vmem>>, %arg6: memref<1x32xf32, #tpu.memory_space<vmem>>, %arg7: memref<1x32xf32, #tpu.memory_space<vmem>>, %arg8: memref<16x32xf32, #tpu.memory_space<vmem>>) attributes {dimension_semantics = [#tpu.dimension_semantics<parallel>], iteration_bounds = array<i64: 1>, scalar_prefetch = 0 : i64, scratch_operands = 0 : i64, tpu.core_type = #tpu.core_type<tc>, window_params = [{transform_indices = @transform_0, window_bounds = array<i64: 16, 32>}, {pipeline_mode = #tpu.pipeline_mode<synchronous>, transform_indices = @transform_1, window_bounds = array<i64: 32, 128>}, {pipeline_mode = #tpu.pipeline_mode<synchronous>, transform_indices = @transform_2, window_bounds = array<i64: 1, 128>}, {pipeline_mode = #tpu.pipeline_mode<synchronous>, transform_indices = @transform_3, window_bounds = array<i64: 128, 32>}, {pipeline_mode = #tpu.pipeline_mode<synchronous>, transform_indices = @transform_4, window_bounds = array<i64: 1, 32>}, {pipeline_mode = #tpu.pipeline_mode<synchronous>, transform_indices = @transform_5, window_bounds = array<i64: 1, 32>}, {pipeline_mode = #tpu.pipeline_mode<synchronous>, transform_indices = @transform_6, window_bounds = array<i64: 1, 32>}, {transform_indices = @transform_7, window_bounds = array<i64: 16, 32>}]} {
    %c0 = arith.constant 0 : index
    %c0_0 = arith.constant 0 : index
    %0 = vector.load %arg1[%c0, %c0_0] : memref<16x32xf32, #tpu.memory_space<vmem>>, vector<16x32xf32>
    %c0_1 = arith.constant 0 : index
    %c0_2 = arith.constant 0 : index
    %1 = vector.load %arg2[%c0_1, %c0_2] : memref<32x128xf32, #tpu.memory_space<vmem>>, vector<32x128xf32>
    %cst = arith.constant dense<0.000000e+00> : vector<16x128xf32>
    %2 = tpu.matmul %0, %1, %cst {dimension_numbers = #tpu.dot_dimension_numbers<[1], [0], [0], [1], [0, 0, 1, 1], [], []>} : vector<16x32xf32>, vector<32x128xf32>, vector<16x128xf32> -> vector<16x128xf32>
    %c0_3 = arith.constant 0 : index
    %c0_4 = arith.constant 0 : index
    %3 = vector.load %arg3[%c0_3, %c0_4] : memref<1x128xf32, #tpu.memory_space<vmem>>, vector<1x128xf32>
    %4 = vector.broadcast %3 : vector<1x128xf32> to vector<16x128xf32>
    %5 = arith.addf %2, %4 : vector<16x128xf32>
    %cst_5 = arith.constant 5.000000e-01 : f32
    %6 = vector.broadcast %cst_5 : f32 to vector<16x128xf32>
    %7 = arith.mulf %5, %6 : vector<16x128xf32>
    %cst_6 = arith.constant 0.707106769 : f32
    %8 = vector.broadcast %cst_6 : f32 to vector<16x128xf32>
    %9 = arith.mulf %5, %8 : vector<16x128xf32>
    %10 = math.erf %9 : vector<16x128xf32>
    %cst_7 = arith.constant 1.000000e+00 : f32
    %11 = vector.broadcast %cst_7 : f32 to vector<16x128xf32>
    %12 = arith.addf %11, %10 : vector<16x128xf32>
    %13 = arith.mulf %7, %12 : vector<16x128xf32>
    %c0_8 = arith.constant 0 : index
    %c0_9 = arith.constant 0 : index
    %14 = vector.load %arg4[%c0_8, %c0_9] : memref<128x32xf32, #tpu.memory_space<vmem>>, vector<128x32xf32>
    %cst_10 = arith.constant dense<0.000000e+00> : vector<16x32xf32>
    %15 = tpu.matmul %13, %14, %cst_10 {dimension_numbers = #tpu.dot_dimension_numbers<[1], [0], [0], [1], [0, 0, 1, 1], [], []>} : vector<16x128xf32>, vector<128x32xf32>, vector<16x32xf32> -> vector<16x32xf32>
    %c0_11 = arith.constant 0 : index
    %c0_12 = arith.constant 0 : index
    %16 = vector.load %arg5[%c0_11, %c0_12] : memref<1x32xf32, #tpu.memory_space<vmem>>, vector<1x32xf32>
    %17 = vector.broadcast %16 : vector<1x32xf32> to vector<16x32xf32>
    %18 = arith.addf %15, %17 : vector<16x32xf32>
    %19 = arith.addf %18, %0 : vector<16x32xf32>
    %c0_13 = arith.constant 0 : index
    %c0_14 = arith.constant 0 : index
    %20 = vector.load %arg6[%c0_13, %c0_14] : memref<1x32xf32, #tpu.memory_space<vmem>>, vector<1x32xf32>
    %c0_15 = arith.constant 0 : index
    %c0_16 = arith.constant 0 : index
    %21 = vector.load %arg7[%c0_15, %c0_16] : memref<1x32xf32, #tpu.memory_space<vmem>>, vector<1x32xf32>
    %cst_17 = arith.constant dense<0.000000e+00> : vector<16xf32>
    %22 = vector.multi_reduction <add>, %19, %cst_17 [1] : vector<16x32xf32> to vector<16xf32>
    %23 = vector.shape_cast %22 : vector<16xf32> to vector<16x1xf32>
    %cst_18 = arith.constant 3.200000e+01 : f32
    %24 = vector.broadcast %cst_18 : f32 to vector<16x1xf32>
    %25 = arith.divf %23, %24 : vector<16x1xf32>
    %26 = vector.broadcast %25 : vector<16x1xf32> to vector<16x32xf32>
    %27 = arith.subf %19, %26 : vector<16x32xf32>
    %28 = arith.mulf %27, %27 : vector<16x32xf32>
    %cst_19 = arith.constant dense<0.000000e+00> : vector<16xf32>
    %29 = vector.multi_reduction <add>, %28, %cst_19 [1] : vector<16x32xf32> to vector<16xf32>
    %30 = vector.shape_cast %29 : vector<16xf32> to vector<16x1xf32>
    %cst_20 = arith.constant 3.200000e+01 : f32
    %31 = vector.broadcast %cst_20 : f32 to vector<16x1xf32>
    %32 = arith.divf %30, %31 : vector<16x1xf32>
    %cst_21 = arith.constant 9.99999996E-13 : f32
    %33 = vector.broadcast %cst_21 : f32 to vector<16x1xf32>
    %34 = arith.addf %32, %33 : vector<16x1xf32>
    %35 = math.sqrt %34 : vector<16x1xf32>
    %36 = vector.broadcast %35 : vector<16x1xf32> to vector<16x32xf32>
    %37 = arith.divf %27, %36 : vector<16x32xf32>
    %38 = vector.broadcast %20 : vector<1x32xf32> to vector<16x32xf32>
    %39 = arith.mulf %37, %38 : vector<16x32xf32>
    %40 = vector.broadcast %21 : vector<1x32xf32> to vector<16x32xf32>
    %41 = arith.addf %39, %40 : vector<16x32xf32>
    %c0_22 = arith.constant 0 : index
    %c0_23 = arith.constant 0 : index
    %42 = vector.load %arg8[%c0_22, %c0_23] : memref<16x32xf32, #tpu.memory_space<vmem>>, vector<16x32xf32>
    tpu.vector_store %arg8[%c0_22, %c0_23], %41 {strides = array<i32>} : memref<16x32xf32, #tpu.memory_space<vmem>>, vector<16x32xf32>,
    return
  }
  func.func @transform_0(%arg0: i32) -> (i32, i32) {
    %c0_i32 = arith.constant 0 : i32
    %c0_i32_0 = arith.constant 0 : i32
    return %arg0, %c0_i32 : i32, i32
  }
  func.func @transform_1(%arg0: i32) -> (i32, i32) {
    %c0_i32 = arith.constant 0 : i32
    %c0_i32_0 = arith.constant 0 : i32
    %c0_i32_1 = arith.constant 0 : i32
    return %c0_i32, %c0_i32_0 : i32, i32
  }
  func.func @transform_2(%arg0: i32) -> (i32, i32) {
    %c0_i32 = arith.constant 0 : i32
    %c0_i32_0 = arith.constant 0 : i32
    %c0_i32_1 = arith.constant 0 : i32
    return %c0_i32, %c0_i32_0 : i32, i32
  }
  func.func @transform_3(%arg0: i32) -> (i32, i32) {
    %c0_i32 = arith.constant 0 : i32
    %c0_i32_0 = arith.constant 0 : i32
    %c0_i32_1 = arith.constant 0 : i32
    return %c0_i32, %c0_i32_0 : i32, i32
  }
  func.func @transform_4(%arg0: i32) -> (i32, i32) {
    %c0_i32 = arith.constant 0 : i32
    %c0_i32_0 = arith.constant 0 : i32
    %c0_i32_1 = arith.constant 0 : i32
    return %c0_i32, %c0_i32_0 : i32, i32
  }
  func.func @transform_5(%arg0: i32) -> (i32, i32) {
    %c0_i32 = arith.constant 0 : i32
    %c0_i32_0 = arith.constant 0 : i32
    %c0_i32_1 = arith.constant 0 : i32
    return %c0_i32, %c0_i32_0 : i32, i32
  }
  func.func @transform_6(%arg0: i32) -> (i32, i32) {
    %c0_i32 = arith.constant 0 : i32
    %c0_i32_0 = arith.constant 0 : i32
    %c0_i32_1 = arith.constant 0 : i32
    return %c0_i32, %c0_i32_0 : i32, i32
  }
  func.func @transform_7(%arg0: i32) -> (i32, i32) {
    %c0_i32 = arith.constant 0 : i32
    %c0_i32_0 = arith.constant 0 : i32
    return %arg0, %c0_i32 : i32, i32
  }
}

</mosaic_0001>

<bundles_post_ra>
// kernel: bert_encoder_forward.8
= control target key start
LH: loop header
LB: loop body
LE: loop exit
PB: predicated region body
PF: predicated region fallthrough
CT: control target
= control target key end

     0   :  { %8 = vsyncpa [#allocation3], 0  ;;  %s186_s12 = smov [#allocation2]   ;;  %s242_s0 = inlined_call_operand.hbm [shape: f32[16,32], index: 0, kind: input, shape index: {}]   ;;  %s243_s1 = inlined_call_operand.vmem [shape: f32[32,96], index: 1, kind: input, shape index: {}]   ;;  %s244_s2 = inlined_call_operand.vmem [shape: f32[1,96], index: 2, kind: input, shape index: {}]   ;;  %s245_s3 = inlined_call_operand.vmem [shape: f32[16,96], index: 3, kind: output, shape index: {}]  }
   0x1   :  { %s14_s13 = sshll.u32 %s186_s12, 4  ;;  %s162_s16 = scalar_lea.hbm %s242_s0, 256  ;;  %s15_s13 = int_to_ptr.vmem [resolvable:$true] %s14_s13 }
   0x2   :  { %p163_p0 = scmp.ne.s32.totalorder %s242_s0, %s162_s16  ;;  %p166_p1 = scmp.lt.u32.totalorder %s162_s16, %s242_s0 }
   0x4   :  { %p168_p2 = pnand %p166_p1, %p163_p0 }
   0x6   :  { %171 = shalt.err (!%p168_p2)
}
   0x7   :  { %s172_s21 = scalar_lea.vmem %s15_s13, 256  ;;  %p177_p4 = scmp.lt.s32.totalorder %s15_s13, %s15_s13 }
   0x8   :  { %p173_p3 = scmp.ne.s32.totalorder %s15_s13, %s172_s21  ;;  %p178_p5 = scmp.lt.s32.totalorder %s172_s21, %s172_s21 }
   0xa   :  { %p179_p6 = por %p178_p5, %p177_p4 }
   0xc   :  { %p180_p7 = pnand %p179_p6, %p173_p3 }
   0xe   :  { %183 = shalt.err (!%p180_p7)
}
   0xf   :  { %s187_s22 = smov 128   ;;  %s188_s23 = smov 8  }
  0x10   :  { %20 = dma.hbm_to_vmem [thread:$0]  %s242_s0, 256, %s15_s13, [#allocation3], %s187_s22, %s187_s22, %s188_s23  }
  0x11   :  { %184 = dma.done.wait [#allocation3], 256  }
  0x12   :  { %185 = vsyncadd [#allocation3], 4294967040  ;;  %vm41_vm0 = vcmask 261120   ;;  %v30_v0 = vld [vmem:[%s243_s1] sm:$0xff]  ;;  %v31_v1 = vld [vmem:[%s243_s1 + $0x8] sm:$0xff]  ;;  %vm123_vm1 = vcmask 785408  }
  0x13   :  { %v32_v2 = vld [vmem:[%s243_s1 + $0x10] sm:$0xff]  ;;  %v151_v3 = vpack.c.bf16 %v31_v1, %v30_v0  ;;  %v33_v4 = vld [vmem:[%s243_s1 + $0x18] sm:$0xff]  ;;  %v28_v5 = vld [vmem:[#allocation2] sm:$0xff] }
  0x14   :  { %v155_v6 = vpack.c.bf16 %v33_v4, %v32_v2  ;;  %148 = vmatprep.mubr.msk.f32.mxu0 %vm41_vm0, %v28_v5  ;;  %v29_v7 = vld [vmem:[#allocation2 + $0x8] sm:$0xff]  ;;  %v131_v8 = vld [vmem:[%s244_s2] ss:$0 sm:$0xff] }
  0x15   :  { %152 = vmatprep.subr.bf16.mxu0 %v151_v3 }
  0x16   :  { %154 = vmatpush3.bf16.msra.mxu0 %v151_v3 }
  0x17   :  { %156 = vmatprep.subr.bf16.mxu0 %v155_v6 }
  0x1a   :  { %158 = vmatpush3.bf16.msra.mxu0 %v155_v6 }
  0x1d   :  { %149 = vmatmul.mubr.msk.f32.vlgmr.msra.gmra.mrb[0].mxu0 %vm41_vm0, %v29_v7 }
  0xf0   :  { %v150_v9 = vpop.f32.mrb[0].mxu0 }
  0xf1   :  { %v120_v10 = vadd.f32 %v150_v9, %v131_v8  ;;  %v114_v11 = vpop.f32.mrb[1].mxu0 }
  0xf2   :  { %v115_v12 = vadd.f32 %v131_v8, %v114_v11 }
  0xf3   :  { %125 = vst.msk [vmem:[%s245_s3 + $0x8] sm:$0xff] %vm123_vm1, %v120_v10 }
  0xf4   :  { %124 = vst.msk [vmem:[%s245_s3] sm:$0xff] %vm123_vm1, %v115_v12 }
  0xf5   :  { %130 = vsyncpa [#allocation3], 1 }

// kernel: bert_encoder_forward.11
= control target key start
LH: loop header
LB: loop body
LE: loop exit
PB: predicated region body
PF: predicated region fallthrough
CT: control target
= control target key end

     0   :  { %vm39_vm0 = vcmask 261120   ;;  %s560_s1 = inlined_call_operand.vmem [shape: f32[32,128], index: 1, kind: input, shape index: {}]   ;;  %s561_s0 = inlined_call_operand.vmem [shape: f32[16,32], index: 0, kind: input, shape index: {}]   ;;  %s562_s3 = inlined_call_operand.vmem [shape: f32[128,32], index: 3, kind: input, shape index: {}]   ;;  %s563_s2 = inlined_call_operand.vmem [shape: f32[1,128], index: 2, kind: input, shape index: {}]   ;;  %s564_s4 = inlined_call_operand.vmem [shape: f32[1,32], index: 4, kind: input, shape index: {}]   ;;  %s565_s5 = inlined_call_operand.vmem [shape: f32[1,32], index: 5, kind: input, shape index: {}]   ;;  %s566_s6 = inlined_call_operand.vmem [shape: f32[1,32], index: 6, kind: input, shape index: {}]   ;;  %s567_s7 = inlined_call_operand.vmem [shape: f32[16,32], index: 7, kind: output, shape index: {}]  }
   0x1   :  { %v28_v0 = vld [vmem:[%s560_s1] sm:$0xff]  ;;  %v29_v1 = vld [vmem:[%s560_s1 + $0x8] sm:$0xff]  ;;  %v30_v2 = vld [vmem:[%s560_s1 + $0x10] sm:$0xff] }
   0x2   :  { %v372_v3 = vpack.c.bf16 %v29_v1, %v28_v0  ;;  %v31_v4 = vld [vmem:[%s560_s1 + $0x18] sm:$0xff]  ;;  %v479_v5 = vld [vmem:[%s561_s0] sm:$0xff]  ;;  %v132_v8 = vld [vmem:[%s562_s3 + $0x8] sm:$0xff] }
   0x3   :  { %v376_v6 = vpack.c.bf16 %v31_v4, %v30_v2  ;;  %334 = vmatprep.mubr.msk.f32.mxu0 %vm39_vm0, %v479_v5  ;;  %v131_v7 = vld [vmem:[%s562_s3] sm:$0xff]  ;;  %v133_v9 = vld [vmem:[%s562_s3 + $0x10] sm:$0xff]  ;;  %v134_v11 = vld [vmem:[%s562_s3 + $0x18] sm:$0xff] }
   0x4   :  { %373 = vmatprep.subr.bf16.mxu0 %v372_v3  ;;  %v380_v10 = vpack.c.bf16 %v132_v8, %v131_v7  ;;  %v384_v12 = vpack.c.bf16 %v134_v11, %v133_v9  ;;  %v135_v13 = vld [vmem:[%s562_s3 + $0x20] sm:$0xff]  ;;  %v136_v14 = vld [vmem:[%s562_s3 + $0x28] sm:$0xff]  ;;  %v137_v17 = vld [vmem:[%s562_s3 + $0x30] sm:$0xff] }
   0x5   :  { %375 = vmatpush3.bf16.msra.mxu0 %v372_v3  ;;  %v388_v15 = vpack.c.bf16 %v136_v14, %v135_v13  ;;  %v27_v16 = vld [vmem:[%s561_s0 + $0x8] sm:$0xff]  ;;  %v138_v18 = vld [vmem:[%s562_s3 + $0x38] sm:$0xff]  ;;  %v139_v20 = vld [vmem:[%s562_s3 + $0x40] sm:$0xff] }
   0x6   :  { %377 = vmatprep.subr.bf16.mxu0 %v376_v6  ;;  %381 = vmatprep.subr.bf16.mxu1 %v380_v10  ;;  %v392_v19 = vpack.c.bf16 %v138_v18, %v137_v17  ;;  %v140_v21 = vld [vmem:[%s562_s3 + $0x48] sm:$0xff]  ;;  %v141_v23 = vld [vmem:[%s562_s3 + $0x50] sm:$0xff]  ;;  %v142_v24 = vld [vmem:[%s562_s3 + $0x58] sm:$0xff] }
   0x7   :  { %383 = vmatpush3.bf16.msra.mxu1 %v380_v10  ;;  %v396_v22 = vpack.c.bf16 %v140_v21, %v139_v20  ;;  %v400_v25 = vpack.c.bf16 %v142_v24, %v141_v23  ;;  %v143_v26 = vld [vmem:[%s562_s3 + $0x60] sm:$0xff]  ;;  %v144_v27 = vld [vmem:[%s562_s3 + $0x68] sm:$0xff]  ;;  %v145_v29 = vld [vmem:[%s562_s3 + $0x70] sm:$0xff] }
   0x8   :  { %385 = vmatprep.subr.bf16.mxu1 %v384_v12  ;;  %v404_v28 = vpack.c.bf16 %v144_v27, %v143_v26  ;;  %v146_v30 = vld [vmem:[%s562_s3 + $0x78] sm:$0xff]  ;;  %v296_v32 = vld [vmem:[%s563_s2] ss:$0 sm:$0xff] }
   0x9   :  { %379 = vmatpush3.bf16.msra.mxu0 %v376_v6  ;;  %v408_v31 = vpack.c.bf16 %v146_v30, %v145_v29  ;;  %v299_v47 = vld [vmem:[%s564_s4] ss:$0 sm:$0xff] }
   0xa   :  { %v301_v21 = vld [vmem:[%s566_s6] ss:$0 sm:$0xff] }
   0xb   :  { %387 = vmatpush3.bf16.msra.mxu1 %v384_v12 }
   0xc   :  { %335 = vmatmul.mubr.msk.f32.vlgmr.msra.gmra.mrb[0].mxu0 %vm39_vm0, %v27_v16  ;;  %389 = vmatprep.subr.bf16.mxu1 %v388_v15 }
   0xf   :  { %391 = vmatpush3.bf16.msra.mxu1 %v388_v15 }
  0x10   :  { %393 = vmatprep.subr.bf16.mxu1 %v392_v19 }
  0x13   :  { %395 = vmatpush3.bf16.msra.mxu1 %v392_v19  ;;  %v300_v19 = vld [vmem:[%s565_s5] ss:$0 sm:$0xff] }
  0x14   :  { %397 = vmatprep.subr.bf16.mxu1 %v396_v22 }
  0x17   :  { %399 = vmatpush3.bf16.msra.mxu1 %v396_v22 }
  0x18   :  { %401 = vmatprep.subr.bf16.mxu1 %v400_v25 }
  0x1b   :  { %403 = vmatpush3.bf16.msra.mxu1 %v400_v25 }
  0x1c   :  { %405 = vmatprep.subr.bf16.mxu1 %v404_v28 }
  0x1f   :  { %407 = vmatpush3.bf16.msra.mxu1 %v404_v28 }
  0x20   :  { %409 = vmatprep.subr.bf16.mxu1 %v408_v31 }
  0x23   :  { %411 = vmatpush3.bf16.msra.mxu1 %v408_v31 }
  0xdf   :  { %v336_v33 = vpop.f32.mrb[0].mxu0 }
  0xe0   :  { %v118_v34 = vadd.f32 %v336_v33, %v296_v32  ;;  %v112_v35 = vpop.f32.mrb[1].mxu0 }
  0xe1   :  { %v113_v36 = vadd.f32 %v296_v32, %v112_v35 }
  0xe2   :  { %v124_v37 = vmul.f32 0.70710677, %v118_v34  ;;  %v122_v44 = vmul.f32 0.5, %v118_v34 }
  0xe3   :  { %v123_v38 = vmul.f32 0.70710677, %v113_v36  ;;  %v121_v42 = vmul.f32 0.5, %v113_v36 }
  0xe4   :  { %412 = verf.f32 %v124_v37 }
  0xe5   :  { %414 = verf.f32 %v123_v38 }
  0xee   :  { %v413_v39 = vpop.eup %412 }
  0xef   :  { %v415_v40 = vpop.eup %414  ;;  %v128_v41 = vadd.f32 1.0, %v413_v39 }
  0xf0   :  { %v127_v43 = vadd.f32 1.0, %v415_v40 }
  0xf1   :  { %v130_v46 = vmul.f32 %v128_v41, %v122_v44 }
  0xf2   :  { %v129_v45 = vmul.f32 %v127_v43, %v121_v42 }
  0xf4   :  { %369 = vmatprep.mubr.f32.mxu1 %v129_v45 }
  0xf5   :  { %370 = vmatmul.mubr.f32.vlgmr.msra.gmra.mrb[0].mxu1 %v130_v46 }
 0x1c8   :  { %v371_v48 = vpop.f32.mrb[0].mxu1 }
 0x1c9   :  { %v220_v49 = vpop.f32.mrb[1].mxu1  ;;  %v226_v50 = vadd.f32 %v371_v48, %v299_v47 }
 0x1ca   :  { %v221_v51 = vadd.f32 %v299_v47, %v220_v49 }
 0x1cb   :  { %v230_v54 = vadd.f32 %v226_v50, %v27_v16 }
 0x1cc   :  { %v229_v52 = vadd.f32 %v221_v51, %v479_v5 }
 0x1cd   :  { %v236_v55 = vsel %vm39_vm0, %v230_v54, 0.0 }
 0x1ce   :  { %v233_v53 = vsel %vm39_vm0, %v229_v52, 0.0 }
 0x1cf   :  { %234 = vadd.xlane.f32.xlu0 %v233_v53 }
 0x1d3   :  { %237 = vadd.xlane.f32.xlu0 %v236_v55 }
 0x25c   :  { %v235_v56 = vpop.xlane.xlu0 %234 }
 0x25d   :  { %v240_v57 = vmul.f32 0.03125, %v235_v56 }
 0x25f   :  { %v242_v58 = vsub.f32 %v229_v52, %v240_v57 }
 0x260   :  { %v238_v59 = vpop.xlane.xlu0 %237 }
 0x261   :  { %v241_v60 = vmul.f32 0.03125, %v238_v59  ;;  %v244_v61 = vmul.f32 %v242_v58, %v242_v58 }
 0x263   :  { %v243_v62 = vsub.f32 %v230_v54, %v241_v60  ;;  %v246_v63 = vsel %vm39_vm0, %v244_v61, 0.0 }
 0x264   :  { %247 = vadd.xlane.f32.xlu1 %v246_v63 }
 0x265   :  { %v245_v0 = vmul.f32 %v243_v62, %v243_v62 }
 0x267   :  { %v249_v1 = vsel %vm39_vm0, %v245_v0, 0.0 }
 0x268   :  { %250 = vadd.xlane.f32.xlu1 %v249_v1 }
 0x2f1   :  { %v248_v2 = vpop.xlane.xlu1 %247 }
 0x2f2   :  { %v252_v3 = vmul.f32 0.03125, %v248_v2 }
 0x2f4   :  { %v254_v4 = vadd.f32 1e-12, %v252_v3 }
 0x2f5   :  { %v251_v5 = vpop.xlane.xlu1 %250 }
 0x2f6   :  { %416 = vrsqrt.f32 %v254_v4  ;;  %v253_v6 = vmul.f32 0.03125, %v251_v5  ;;  %vm258_vm1 = vcmp.eq.f32.partialorder %v254_v4, inf  ;;  %v261_v10 = vand.u32 2147483648, %v254_v4 }
 0x2f7   :  { %vm260_vm2 = vcmp.eq.f32.partialorder %v254_v4, 0.0 }
 0x2f8   :  { %v255_v7 = vadd.f32 1e-12, %v253_v6 }
 0x2fa   :  { %418 = vrsqrt.f32 %v255_v7  ;;  %vm265_vm3 = vcmp.eq.f32.partialorder %v255_v7, inf  ;;  %v268_v15 = vand.u32 2147483648, %v255_v7  ;;  %vm267_vm4 = vcmp.eq.f32.partialorder %v255_v7, 0.0 }
 0x300   :  { %v417_v8 = vpop.eup %416 }
 0x301   :  { %v257_v9 = vmul.f32 %v417_v8, %v254_v4 }
 0x303   :  { %v259_v11 = vsel %vm258_vm1, %v254_v4, %v257_v9 }
 0x304   :  { %v262_v12 = vsel %vm260_vm2, %v261_v10, %v259_v11  ;;  %v419_v13 = vpop.eup %418 }
 0x305   :  { %420 = vrcp.f32 %v262_v12  ;;  %v264_v14 = vmul.f32 %v419_v13, %v255_v7 }
 0x307   :  { %v266_v16 = vsel %vm265_vm3, %v255_v7, %v264_v14 }
 0x308   :  { %v269_v17 = vsel %vm267_vm4, %v268_v15, %v266_v16 }
 0x309   :  { %422 = vrcp.f32 %v269_v17 }
 0x30f   :  { %v421_v18 = vpop.eup %420 }
 0x310   :  { %v271_v20 = vmul.f32 %v421_v18, %v242_v58 }
 0x312   :  { %v280_v22 = vmul.f32 %v300_v19, %v271_v20 }
 0x313   :  { %v423_v23 = vpop.eup %422 }
 0x314   :  { %v288_v24 = vadd.f32 %v301_v21, %v280_v22  ;;  %v273_v25 = vmul.f32 %v423_v23, %v243_v62 }
 0x316   :  { %290 = vst.msk [vmem:[%s567_s7] sm:$0xff] %vm39_vm0, %v288_v24  ;;  %v281_v26 = vmul.f32 %v300_v19, %v273_v25 }
 0x318   :  { %v289_v27 = vadd.f32 %v301_v21, %v281_v26 }
 0x31a   :  { %291 = vst.msk [vmem:[%s567_s7 + $0x8] sm:$0xff] %vm39_vm0, %v289_v27 }

// kernel: bert_encoder_forward.9
= control target key start
LH: loop header
LB: loop body
LE: loop exit
PB: predicated region body
PF: predicated region fallthrough
CT: control target
= control target key end

     0   :  { %s756_s15 = smov 0   ;;  %s758_s16 = smov 0   ;;  %s828_s0 = inlined_call_operand.vmem [shape: f32[2,1,8], index: 0, kind: input, shape index: {}]   ;;  %s829_s1 = inlined_call_operand.vmem [shape: f32[2,4,8,8], index: 1, kind: input, shape index: {}]   ;;  %s830_s2 = inlined_call_operand.vmem [shape: f32[2,4,8,8], index: 2, kind: input, shape index: {}]   ;;  %s831_s3 = inlined_call_operand.vmem [shape: f32[2,4,8,8], index: 3, kind: input, shape index: {}]   ;;  %s832_s4 = inlined_call_operand.vmem [shape: f32[2,4,8,8], index: 4, kind: output, shape index: {}]  }
   0x1   :  { %s760_s17 = smov 0   ;;  %s762_s18 = smov 0  }
   0x2   :  { %s764_s19 = smov 0  }
   0x3 LB: > { %s23_s20 = sadd.s32 1, %s719_s17  ;;  %s26_s21 = sadd.s32 1, %s723_s18  ;;  %s727_s19 = sphi %s764_s19, %s14_s19   ;;  %s723_s18 = sphi %s762_s18, %s836_s18   ;;  %s719_s17 = sphi %s760_s17, %s835_s17   ;;  %s715_s16 = sphi %s758_s16, %s834_s16   ;;  %s711_s15 = sphi %s756_s15, %s833_s15  }
   0x4   : > { %p24_p0 = scmp.ge.s32.totalorder %s23_s20, 4  ;;  %p614_p1 = scmp.ge.s32.totalorder %s727_s19, 1 }
   0x5   : > { %p219_p2 = scmp.lt.s32.totalorder %s727_s19, 9 }
   0x6   : > { %s838_s20 = smov (%p24_p0, %s23_s20), 0  ;;  %s840_s21 = smov (!%p24_p0, %s26_s21), %s723_s18 }
   0x7   : > { %p220_p3 = pnand %p614_p1, %p219_p2  ;;  %p28_p4 = scmp.ge.s32.totalorder %s840_s21, 2 }
   0x8   : > { %p270_p5 = scmp.lt.s32.totalorder (!%p220_p3), %s715_s16, 1  ;;  %p275_p6 = scmp.lt.s32.totalorder (!%p220_p3), %s711_s15, 3  ;;  %v729_v0 = vmov (!%p220_p3), 0.0   ;;  %vm730_vm0 = vmmov (!%p220_p3), 0   ;;  %vm308_vm1 = vcmask (!%p220_p3), 64512  }
   0x9   : > { %s842_s21 = smov (%p28_p4, %s840_s21), 0  ;;  %223 = sbr.rel (%p220_p3) target bundleno = 768 (0x300), region = 36 }
   0xa   : > { %633 = vmatprep.subr.mxu0 (!%p220_p3), %v729_v0  ;;  %635 = vmatprep.mubr.msk.f32.mxu0 (!%p220_p3), %vm730_vm0, %v729_v0 }
   0xb   : > { %638 = vmatprep.subr.mxu1 (!%p220_p3), %v729_v0  ;;  %640 = vmatprep.mubr.msk.f32.mxu1 (!%p220_p3), %vm730_vm0, %v729_v0 }
  0x10   : > { %s844_s16 = smov (!%p270_p5, %s715_s16), 1  ;;  %s846_s15 = smov (!%p275_p6, %s711_s15), 3 }
  0x11   : > { %s615_s22 = sshll.u32 %s844_s16, 2  ;;  %s272_s7 = scalar_lea.vmem %s828_s0, %s844_s16 }
  0x12   : > { %s278_s23 = sadd.s32 %s615_s22, %s846_s15  ;;  %v625_v4 = vld [vmem:[%s272_s7] ss:$0 sm:$0xff] }
  0x13   : > { %s786_s24 = sshll.u32 %s278_s23, 3 }
  0x14   : > { %s288_s27 = scalar_lea.vmem %s830_s2, %s786_s24  ;;  %s280_s30 = scalar_lea.vmem %s829_s1, %s786_s24 }
  0x15   : > { %v306_v1 = vld [vmem:[%s288_s27] sm:$0xff]  ;;  %s296_s10 = scalar_lea.vmem %s831_s3, %s786_s24  ;;  %s304_s13 = scalar_lea.vmem %s832_s4, %s786_s24 }
  0x16   : > { %634 = vmatpush3.xpose.msk.msra.mxu0 %vm308_vm1, %v306_v1  ;;  %v305_v2 = vld [vmem:[%s280_s30] sm:$0xff] }
  0x17   : > { %v307_v14 = vld [vmem:[%s296_s10] sm:$0xff] }
  0x18   : > { %639 = vmatpush3.msra.mxu1 %v307_v14 }
  0x19   : > { %636 = vmatmul.mubr.msk.f32.vlgmr.msra.gmra.mrb[0].mxu0 %vm308_vm1, %v305_v2 }
  0xec   : > { %v381_v3 = vpop.f32.mrb[0].mxu0 }
  0xed   : > { %v385_v5 = vmul.f32 0.35355338, %v381_v3  ;;  %v637_v6 = vpop.f32.mrb[1].mxu0 }
  0xef   : > { %v393_v7 = vadd.f32 %v625_v4, %v385_v5 }
  0xf1   : > { %v394_v8 = vsel %vm308_vm1, %v393_v7, -inf }
  0xf2   : > { %395 = vmax.xlane.f32.xlu0 %v394_v8 }
 0x17f   : > { %v396_v9 = vpop.xlane.xlu0 %395 }
 0x180   : > { %v397_v10 = vsub.f32 %v393_v7, %v396_v9 }
 0x182   : > { %v398_v11 = vmul.f32 1.442695, %v397_v10 }
 0x184   : > { %685 = vpow2.f32 %v398_v11 }
 0x18e   : > { %v686_v12 = vpop.eup %685 }
 0x18f   : > { %v400_v13 = vsel %vm308_vm1, %v686_v12, 0.0 }
 0x190   : > { %401 = vadd.xlane.f32.xlu0 %v400_v13 }
 0x21d   : > { %v402_v15 = vpop.xlane.xlu0 %401 }
 0x21e   : > { %687 = vrcp.f32 %v402_v15 }
 0x228   : > { %v688_v16 = vpop.eup %687 }
 0x229   : > { %v404_v17 = vmul.f32 %v688_v16, %v686_v12 }
 0x22b   : > { %641 = vmatmul.mubr.msk.f32.vlgmr.msra.gmra.mrb[0].mxu1 %vm308_vm1, %v404_v17 }
 0x2fe   : > { %v474_v18 = vpop.f32.mrb[0].mxu1 }
 0x2ff   : > { %478 = vst.msk [vmem:[%s304_s13] sm:$0xff] %vm308_vm1, %v474_v18  ;;  %v642_v19 = vpop.f32.mrb[1].mxu1 }
 0x300 PF: > { %s14_s19 = sadd.s32 1, %s727_s19   ;;  %s833_s15 = smov %s719_s17 }
 0x301   : > { %p11_p7 = scmp.ge.s32.totalorder %s14_s19, 10   ;;  %s834_s16 = smov %s723_s18 }
 0x302   : > { %s835_s17 = smov %s838_s20  ;;  %s836_s18 = smov %s842_s21 }
 0x303   :  { %13 = sbr.rel (!%p11_p7) target bundleno = 3 (0x3), region = 75 }

// kernel: bert_encoder_forward.10
= control target key start
LH: loop header
LB: loop body
LE: loop exit
PB: predicated region body
PF: predicated region fallthrough
CT: control target
= control target key end

     0   :  { %vm36_vm0 = vcmask 261120   ;;  %s307_s2 = inlined_call_operand.vmem [shape: f32[32,32], index: 2, kind: input, shape index: {}]   ;;  %s308_s0 = inlined_call_operand.vmem [shape: f32[16,32], index: 0, kind: input, shape index: {}]   ;;  %s309_s3 = inlined_call_operand.vmem [shape: f32[1,32], index: 3, kind: input, shape index: {}]   ;;  %s310_s1 = inlined_call_operand.vmem [shape: f32[16,32], index: 1, kind: input, shape index: {}]   ;;  %s311_s4 = inlined_call_operand.vmem [shape: f32[1,32], index: 4, kind: input, shape index: {}]   ;;  %s312_s5 = inlined_call_operand.vmem [shape: f32[1,32], index: 5, kind: input, shape index: {}]   ;;  %s313_s6 = inlined_call_operand.vmem [shape: f32[16,32], index: 6, kind: output, shape index: {}]  }
   0x1   :  { %v25_v0 = vld [vmem:[%s307_s2] sm:$0xff]  ;;  %v26_v1 = vld [vmem:[%s307_s2 + $0x8] sm:$0xff]  ;;  %v27_v2 = vld [vmem:[%s307_s2 + $0x10] sm:$0xff] }
   0x2   :  { %v209_v3 = vpack.c.bf16 %v26_v1, %v25_v0  ;;  %v28_v4 = vld [vmem:[%s307_s2 + $0x18] sm:$0xff]  ;;  %v23_v5 = vld [vmem:[%s308_s0] sm:$0xff]  ;;  %v24_v7 = vld [vmem:[%s308_s0 + $0x8] sm:$0xff] }
   0x3   :  { %v213_v6 = vpack.c.bf16 %v28_v4, %v27_v2  ;;  %206 = vmatprep.mubr.msk.f32.mxu0 %vm36_vm0, %v23_v5  ;;  %v187_v8 = vld [vmem:[%s309_s3] ss:$0 sm:$0xff]  ;;  %v119_v14 = vld [vmem:[%s310_s1 + $0x8] sm:$0xff] }
   0x4   :  { %210 = vmatprep.subr.bf16.mxu0 %v209_v3  ;;  %v118_v11 = vld [vmem:[%s310_s1] sm:$0xff] }
   0x5   :  { %212 = vmatpush3.bf16.msra.mxu0 %v209_v3  ;;  %v190_v46 = vld [vmem:[%s311_s4] ss:$0 sm:$0xff] }
   0x6   :  { %214 = vmatprep.subr.bf16.mxu0 %v213_v6  ;;  %v191_v48 = vld [vmem:[%s312_s5] ss:$0 sm:$0xff] }
   0x9   :  { %216 = vmatpush3.bf16.msra.mxu0 %v213_v6 }
   0xc   :  { %207 = vmatmul.mubr.msk.f32.vlgmr.msra.gmra.mrb[0].mxu0 %vm36_vm0, %v24_v7 }
  0xdf   :  { %v208_v9 = vpop.f32.mrb[0].mxu0 }
  0xe0   :  { %v109_v10 = vpop.f32.mrb[1].mxu0  ;;  %v115_v12 = vadd.f32 %v208_v9, %v187_v8 }
  0xe1   :  { %v110_v13 = vadd.f32 %v187_v8, %v109_v10 }
  0xe2   :  { %v121_v17 = vadd.f32 %v119_v14, %v115_v12 }
  0xe3   :  { %v120_v15 = vadd.f32 %v118_v11, %v110_v13 }
  0xe4   :  { %v127_v18 = vsel %vm36_vm0, %v121_v17, 0.0 }
  0xe5   :  { %v124_v16 = vsel %vm36_vm0, %v120_v15, 0.0 }
  0xe6   :  { %125 = vadd.xlane.f32.xlu0 %v124_v16 }
  0xea   :  { %128 = vadd.xlane.f32.xlu0 %v127_v18 }
 0x173   :  { %v126_v19 = vpop.xlane.xlu0 %125 }
 0x174   :  { %v131_v20 = vmul.f32 0.03125, %v126_v19 }
 0x176   :  { %v133_v21 = vsub.f32 %v120_v15, %v131_v20 }
 0x177   :  { %v129_v22 = vpop.xlane.xlu0 %128 }
 0x178   :  { %v132_v23 = vmul.f32 0.03125, %v129_v22  ;;  %v135_v24 = vmul.f32 %v133_v21, %v133_v21 }
 0x17a   :  { %v134_v25 = vsub.f32 %v121_v17, %v132_v23  ;;  %v137_v26 = vsel %vm36_vm0, %v135_v24, 0.0 }
 0x17b   :  { %138 = vadd.xlane.f32.xlu1 %v137_v26 }
 0x17c   :  { %v136_v27 = vmul.f32 %v134_v25, %v134_v25 }
 0x17e   :  { %v140_v28 = vsel %vm36_vm0, %v136_v27, 0.0 }
 0x17f   :  { %141 = vadd.xlane.f32.xlu1 %v140_v28 }
 0x208   :  { %v139_v29 = vpop.xlane.xlu1 %138 }
 0x209   :  { %v143_v30 = vmul.f32 0.03125, %v139_v29 }
 0x20b   :  { %v145_v31 = vadd.f32 1e-12, %v143_v30 }
 0x20c   :  { %v142_v32 = vpop.xlane.xlu1 %141 }
 0x20d   :  { %217 = vrsqrt.f32 %v145_v31  ;;  %v144_v33 = vmul.f32 0.03125, %v142_v32  ;;  %vm149_vm1 = vcmp.eq.f32.partialorder %v145_v31, inf  ;;  %v152_v37 = vand.u32 2147483648, %v145_v31 }
 0x20e   :  { %vm151_vm2 = vcmp.eq.f32.partialorder %v145_v31, 0.0 }
 0x20f   :  { %v146_v34 = vadd.f32 1e-12, %v144_v33 }
 0x211   :  { %219 = vrsqrt.f32 %v146_v34  ;;  %vm156_vm3 = vcmp.eq.f32.partialorder %v146_v34, inf  ;;  %v159_v42 = vand.u32 2147483648, %v146_v34  ;;  %vm158_vm4 = vcmp.eq.f32.partialorder %v146_v34, 0.0 }
 0x217   :  { %v218_v35 = vpop.eup %217 }
 0x218   :  { %v148_v36 = vmul.f32 %v218_v35, %v145_v31 }
 0x21a   :  { %v150_v38 = vsel %vm149_vm1, %v145_v31, %v148_v36 }
 0x21b   :  { %v153_v39 = vsel %vm151_vm2, %v152_v37, %v150_v38  ;;  %v220_v40 = vpop.eup %219 }
 0x21c   :  { %221 = vrcp.f32 %v153_v39  ;;  %v155_v41 = vmul.f32 %v220_v40, %v146_v34 }
 0x21e   :  { %v157_v43 = vsel %vm156_vm3, %v146_v34, %v155_v41 }
 0x21f   :  { %v160_v44 = vsel %vm158_vm4, %v159_v42, %v157_v43 }
 0x220   :  { %223 = vrcp.f32 %v160_v44 }
 0x226   :  { %v222_v45 = vpop.eup %221 }
 0x227   :  { %v162_v47 = vmul.f32 %v222_v45, %v133_v21 }
 0x229   :  { %v171_v49 = vmul.f32 %v190_v46, %v162_v47 }
 0x22a   :  { %v224_v50 = vpop.eup %223 }
 0x22b   :  { %v179_v51 = vadd.f32 %v191_v48, %v171_v49  ;;  %v164_v52 = vmul.f32 %v224_v50, %v134_v25 }
 0x22d   :  { %181 = vst.msk [vmem:[%s313_s6] sm:$0xff] %vm36_vm0, %v179_v51  ;;  %v172_v53 = vmul.f32 %v190_v46, %v164_v52 }
 0x22f   :  { %v180_v54 = vadd.f32 %v191_v48, %v172_v53 }
 0x231   :  { %182 = vst.msk [vmem:[%s313_s6 + $0x8] sm:$0xff] %vm36_vm0, %v180_v54 }

// kernel: bert_encoder_forward.12
= control target key start
LH: loop header
LB: loop body
LE: loop exit
PB: predicated region body
PF: predicated region fallthrough
CT: control target
= control target key end

     0   :  { %vm27_vm0 = vcmask 261120   ;;  %vm109_vm1 = vcmask 785408   ;;  %s191_s1 = inlined_call_operand.vmem [shape: f32[32,96], index: 1, kind: input, shape index: {}]   ;;  %s192_s0 = inlined_call_operand.vmem [shape: f32[16,32], index: 0, kind: input, shape index: {}]   ;;  %s193_s2 = inlined_call_operand.vmem [shape: f32[1,96], index: 2, kind: input, shape index: {}]   ;;  %s194_s3 = inlined_call_operand.vmem [shape: f32[16,96], index: 3, kind: output, shape index: {}]  }
   0x1   :  { %v16_v0 = vld [vmem:[%s191_s1] sm:$0xff]  ;;  %v17_v1 = vld [vmem:[%s191_s1 + $0x8] sm:$0xff]  ;;  %v18_v2 = vld [vmem:[%s191_s1 + $0x10] sm:$0xff] }
   0x2   :  { %v136_v3 = vpack.c.bf16 %v17_v1, %v16_v0  ;;  %v19_v4 = vld [vmem:[%s191_s1 + $0x18] sm:$0xff]  ;;  %v14_v5 = vld [vmem:[%s192_s0] sm:$0xff]  ;;  %v15_v7 = vld [vmem:[%s192_s0 + $0x8] sm:$0xff] }
   0x3   :  { %v140_v6 = vpack.c.bf16 %v19_v4, %v18_v2  ;;  %133 = vmatprep.mubr.msk.f32.mxu0 %vm27_vm0, %v14_v5  ;;  %v116_v8 = vld [vmem:[%s193_s2] ss:$0 sm:$0xff] }
   0x4   :  { %137 = vmatprep.subr.bf16.mxu0 %v136_v3 }
   0x5   :  { %139 = vmatpush3.bf16.msra.mxu0 %v136_v3 }
   0x6   :  { %141 = vmatprep.subr.bf16.mxu0 %v140_v6 }
   0x9   :  { %143 = vmatpush3.bf16.msra.mxu0 %v140_v6 }
   0xc   :  { %134 = vmatmul.mubr.msk.f32.vlgmr.msra.gmra.mrb[0].mxu0 %vm27_vm0, %v15_v7 }
  0xdf   :  { %v135_v9 = vpop.f32.mrb[0].mxu0 }
  0xe0   :  { %v106_v10 = vadd.f32 %v135_v9, %v116_v8  ;;  %v100_v11 = vpop.f32.mrb[1].mxu0 }
  0xe1   :  { %v101_v12 = vadd.f32 %v116_v8, %v100_v11 }
  0xe2   :  { %111 = vst.msk [vmem:[%s194_s3 + $0x8] sm:$0xff] %vm109_vm1, %v106_v10 }
  0xe3   :  { %110 = vst.msk [vmem:[%s194_s3] sm:$0xff] %vm109_vm1, %v101_v12 }

// kernel: bert_encoder_forward.15
= control target key start
LH: loop header
LB: loop body
LE: loop exit
PB: predicated region body
PF: predicated region fallthrough
CT: control target
= control target key end

     0   :  { %vm40_vm0 = vcmask 261120   ;;  %s609_s0 = inlined_call_operand.vmem [shape: f32[16,32], index: 0, kind: input, shape index: {}]   ;;  %s610_s1 = inlined_call_operand.vmem [shape: f32[32,128], index: 1, kind: input, shape index: {}]   ;;  %s611_s2 = inlined_call_operand.vmem [shape: f32[1,128], index: 2, kind: input, shape index: {}]   ;;  %s612_s3 = inlined_call_operand.vmem [shape: f32[128,32], index: 3, kind: input, shape index: {}]   ;;  %s613_s4 = inlined_call_operand.vmem [shape: f32[1,32], index: 4, kind: input, shape index: {}]   ;;  %s614_s5 = inlined_call_operand.vmem [shape: f32[1,32], index: 5, kind: input, shape index: {}]   ;;  %s615_s6 = inlined_call_operand.vmem [shape: f32[1,32], index: 6, kind: input, shape index: {}]   ;;  %s616_s7 = inlined_call_operand.hbm [shape: f32[16,32], index: 7, kind: output, shape index: {}]  }
   0x1   :  { %v29_v0 = vld [vmem:[%s610_s1] sm:$0xff]  ;;  %v30_v1 = vld [vmem:[%s610_s1 + $0x8] sm:$0xff]  ;;  %v31_v2 = vld [vmem:[%s610_s1 + $0x10] sm:$0xff] }
   0x2   :  { %v385_v3 = vpack.c.bf16 %v30_v1, %v29_v0  ;;  %v32_v4 = vld [vmem:[%s610_s1 + $0x18] sm:$0xff]  ;;  %v522_v5 = vld [vmem:[%s609_s0] sm:$0xff]  ;;  %v133_v8 = vld [vmem:[%s612_s3 + $0x8] sm:$0xff] }
   0x3   :  { %v389_v6 = vpack.c.bf16 %v32_v4, %v31_v2  ;;  %347 = vmatprep.mubr.msk.f32.mxu0 %vm40_vm0, %v522_v5  ;;  %v132_v7 = vld [vmem:[%s612_s3] sm:$0xff]  ;;  %v134_v9 = vld [vmem:[%s612_s3 + $0x10] sm:$0xff]  ;;  %v135_v11 = vld [vmem:[%s612_s3 + $0x18] sm:$0xff] }
   0x4   :  { %386 = vmatprep.subr.bf16.mxu0 %v385_v3  ;;  %v393_v10 = vpack.c.bf16 %v133_v8, %v132_v7  ;;  %v397_v12 = vpack.c.bf16 %v135_v11, %v134_v9  ;;  %v136_v13 = vld [vmem:[%s612_s3 + $0x20] sm:$0xff]  ;;  %v137_v14 = vld [vmem:[%s612_s3 + $0x28] sm:$0xff] }
   0x5   :  { %388 = vmatpush3.bf16.msra.mxu0 %v385_v3 }
   0x6   :  { %12 = vsyncpa [#allocation3], 0  ;;  %390 = vmatprep.subr.bf16.mxu0 %v389_v6  ;;  %394 = vmatprep.subr.bf16.mxu1 %v393_v10  ;;  %v401_v15 = vpack.c.bf16 %v137_v14, %v136_v13  ;;  %v28_v16 = vld [vmem:[%s609_s0 + $0x8] sm:$0xff]  ;;  %v138_v17 = vld [vmem:[%s612_s3 + $0x30] sm:$0xff]  ;;  %s464_s24 = smov [#allocation2]  }
   0x7   :  { %396 = vmatpush3.bf16.msra.mxu1 %v393_v10  ;;  %v139_v18 = vld [vmem:[%s612_s3 + $0x38] sm:$0xff]  ;;  %v140_v20 = vld [vmem:[%s612_s3 + $0x40] sm:$0xff]  ;;  %v141_v21 = vld [vmem:[%s612_s3 + $0x48] sm:$0xff]  ;;  %s298_s25 = sshll.u32 %s464_s24, 4  ;;  %s299_s25 = int_to_ptr.vmem [resolvable:$true] %s298_s25 }
   0x8   :  { %398 = vmatprep.subr.bf16.mxu1 %v397_v12  ;;  %v405_v19 = vpack.c.bf16 %v139_v18, %v138_v17  ;;  %v409_v22 = vpack.c.bf16 %v141_v21, %v140_v20  ;;  %v142_v23 = vld [vmem:[%s612_s3 + $0x50] sm:$0xff]  ;;  %v143_v24 = vld [vmem:[%s612_s3 + $0x58] sm:$0xff]  ;;  %v144_v26 = vld [vmem:[%s612_s3 + $0x60] sm:$0xff]  ;;  %s440_s26 = scalar_lea.vmem %s299_s25, 256  ;;  %p445_p1 = scmp.lt.s32.totalorder %s299_s25, %s299_s25 }
   0x9   :  { %392 = vmatpush3.bf16.msra.mxu0 %v389_v6  ;;  %v413_v25 = vpack.c.bf16 %v143_v24, %v142_v23  ;;  %v145_v27 = vld [vmem:[%s612_s3 + $0x68] sm:$0xff]  ;;  %v146_v29 = vld [vmem:[%s612_s3 + $0x70] sm:$0xff]  ;;  %v147_v30 = vld [vmem:[%s612_s3 + $0x78] sm:$0xff]  ;;  %p441_p0 = scmp.ne.s32.totalorder %s299_s25, %s440_s26  ;;  %p446_p2 = scmp.lt.s32.totalorder %s440_s26, %s440_s26 }
   0xa   :  { %v417_v28 = vpack.c.bf16 %v145_v27, %v144_v26  ;;  %v421_v31 = vpack.c.bf16 %v147_v30, %v146_v29  ;;  %v309_v32 = vld [vmem:[%s611_s2] ss:$0 sm:$0xff] }
   0xb   :  { %400 = vmatpush3.bf16.msra.mxu1 %v397_v12  ;;  %v312_v47 = vld [vmem:[%s613_s4] ss:$0 sm:$0xff]  ;;  %p447_p3 = por %p446_p2, %p445_p1 }
   0xc   :  { %348 = vmatmul.mubr.msk.f32.vlgmr.msra.gmra.mrb[0].mxu0 %vm40_vm0, %v28_v16  ;;  %402 = vmatprep.subr.bf16.mxu1 %v401_v15  ;;  %v314_v21 = vld [vmem:[%s615_s6] ss:$0 sm:$0xff] }
   0xd   :  { %p448_p4 = pnand %p447_p3, %p441_p0 }
   0xf   :  { %404 = vmatpush3.bf16.msra.mxu1 %v401_v15 }
  0x10   :  { %406 = vmatprep.subr.bf16.mxu1 %v405_v19 }
  0x13   :  { %408 = vmatpush3.bf16.msra.mxu1 %v405_v19  ;;  %v313_v19 = vld [vmem:[%s614_s5] ss:$0 sm:$0xff] }
  0x14   :  { %410 = vmatprep.subr.bf16.mxu1 %v409_v22 }
  0x17   :  { %412 = vmatpush3.bf16.msra.mxu1 %v409_v22 }
  0x18   :  { %414 = vmatprep.subr.bf16.mxu1 %v413_v25 }
  0x1b   :  { %416 = vmatpush3.bf16.msra.mxu1 %v413_v25 }
  0x1c   :  { %418 = vmatprep.subr.bf16.mxu1 %v417_v28 }
  0x1f   :  { %420 = vmatpush3.bf16.msra.mxu1 %v417_v28 }
  0x20   :  { %422 = vmatprep.subr.bf16.mxu1 %v421_v31 }
  0x23   :  { %424 = vmatpush3.bf16.msra.mxu1 %v421_v31 }
  0xdf   :  { %v349_v33 = vpop.f32.mrb[0].mxu0 }
  0xe0   :  { %v119_v34 = vadd.f32 %v349_v33, %v309_v32  ;;  %v113_v35 = vpop.f32.mrb[1].mxu0 }
  0xe1   :  { %v114_v36 = vadd.f32 %v309_v32, %v113_v35 }
  0xe2   :  { %v125_v37 = vmul.f32 0.70710677, %v119_v34  ;;  %v123_v44 = vmul.f32 0.5, %v119_v34 }
  0xe3   :  { %v124_v38 = vmul.f32 0.70710677, %v114_v36  ;;  %v122_v42 = vmul.f32 0.5, %v114_v36 }
  0xe4   :  { %428 = verf.f32 %v125_v37 }
  0xe5   :  { %430 = verf.f32 %v124_v38 }
  0xee   :  { %v429_v39 = vpop.eup %428 }
  0xef   :  { %v431_v40 = vpop.eup %430  ;;  %v129_v41 = vadd.f32 1.0, %v429_v39 }
  0xf0   :  { %v128_v43 = vadd.f32 1.0, %v431_v40 }
  0xf1   :  { %v131_v46 = vmul.f32 %v129_v41, %v123_v44 }
  0xf2   :  { %v130_v45 = vmul.f32 %v128_v43, %v122_v42 }
  0xf4   :  { %382 = vmatprep.mubr.f32.mxu1 %v130_v45 }
  0xf5   :  { %383 = vmatmul.mubr.f32.vlgmr.msra.gmra.mrb[0].mxu1 %v131_v46 }
 0x1c8   :  { %v384_v48 = vpop.f32.mrb[0].mxu1 }
 0x1c9   :  { %v221_v49 = vpop.f32.mrb[1].mxu1  ;;  %v227_v50 = vadd.f32 %v384_v48, %v312_v47 }
 0x1ca   :  { %v222_v51 = vadd.f32 %v312_v47, %v221_v49 }
 0x1cb   :  { %v231_v54 = vadd.f32 %v227_v50, %v28_v16 }
 0x1cc   :  { %v230_v52 = vadd.f32 %v222_v51, %v522_v5 }
 0x1cd   :  { %v237_v55 = vsel %vm40_vm0, %v231_v54, 0.0 }
 0x1ce   :  { %v234_v53 = vsel %vm40_vm0, %v230_v52, 0.0 }
 0x1cf   :  { %235 = vadd.xlane.f32.xlu0 %v234_v53 }
 0x1d3   :  { %238 = vadd.xlane.f32.xlu0 %v237_v55 }
 0x25c   :  { %v236_v56 = vpop.xlane.xlu0 %235 }
 0x25d   :  { %v241_v57 = vmul.f32 0.03125, %v236_v56 }
 0x25f   :  { %v243_v58 = vsub.f32 %v230_v52, %v241_v57 }
 0x260   :  { %v239_v59 = vpop.xlane.xlu0 %238 }
 0x261   :  { %v242_v60 = vmul.f32 0.03125, %v239_v59  ;;  %v245_v61 = vmul.f32 %v243_v58, %v243_v58 }
 0x263   :  { %v244_v62 = vsub.f32 %v231_v54, %v242_v60  ;;  %v247_v63 = vsel %vm40_vm0, %v245_v61, 0.0 }
 0x264   :  { %248 = vadd.xlane.f32.xlu1 %v247_v63 }
 0x265   :  { %v246_v0 = vmul.f32 %v244_v62, %v244_v62 }
 0x267   :  { %v250_v1 = vsel %vm40_vm0, %v246_v0, 0.0 }
 0x268   :  { %251 = vadd.xlane.f32.xlu1 %v250_v1 }
 0x2f1   :  { %v249_v2 = vpop.xlane.xlu1 %248 }
 0x2f2   :  { %v253_v3 = vmul.f32 0.03125, %v249_v2 }
 0x2f4   :  { %v255_v4 = vadd.f32 1e-12, %v253_v3 }
 0x2f5   :  { %v252_v5 = vpop.xlane.xlu1 %251 }
 0x2f6   :  { %432 = vrsqrt.f32 %v255_v4  ;;  %v254_v6 = vmul.f32 0.03125, %v252_v5  ;;  %vm259_vm1 = vcmp.eq.f32.partialorder %v255_v4, inf  ;;  %v262_v10 = vand.u32 2147483648, %v255_v4 }
 0x2f7   :  { %vm261_vm2 = vcmp.eq.f32.partialorder %v255_v4, 0.0 }
 0x2f8   :  { %v256_v7 = vadd.f32 1e-12, %v254_v6 }
 0x2fa   :  { %434 = vrsqrt.f32 %v256_v7  ;;  %vm266_vm3 = vcmp.eq.f32.partialorder %v256_v7, inf  ;;  %v269_v15 = vand.u32 2147483648, %v256_v7  ;;  %vm268_vm4 = vcmp.eq.f32.partialorder %v256_v7, 0.0 }
 0x300   :  { %v433_v8 = vpop.eup %432 }
 0x301   :  { %v258_v9 = vmul.f32 %v433_v8, %v255_v4 }
 0x303   :  { %v260_v11 = vsel %vm259_vm1, %v255_v4, %v258_v9 }
 0x304   :  { %v263_v12 = vsel %vm261_vm2, %v262_v10, %v260_v11  ;;  %v435_v13 = vpop.eup %434 }
 0x305   :  { %436 = vrcp.f32 %v263_v12  ;;  %v265_v14 = vmul.f32 %v435_v13, %v256_v7 }
 0x307   :  { %v267_v16 = vsel %vm266_vm3, %v256_v7, %v265_v14 }
 0x308   :  { %v270_v17 = vsel %vm268_vm4, %v269_v15, %v267_v16 }
 0x309   :  { %438 = vrcp.f32 %v270_v17 }
 0x30f   :  { %v437_v18 = vpop.eup %436 }
 0x310   :  { %v272_v20 = vmul.f32 %v437_v18, %v243_v58 }
 0x312   :  { %v281_v22 = vmul.f32 %v313_v19, %v272_v20 }
 0x313   :  { %v439_v23 = vpop.eup %438 }
 0x314   :  { %v289_v24 = vadd.f32 %v314_v21, %v281_v22  ;;  %v274_v25 = vmul.f32 %v439_v23, %v244_v62 }
 0x316   :  { %291 = vst.msk [vmem:[#allocation2] sm:$0xff] %vm40_vm0, %v289_v24  ;;  %v282_v26 = vmul.f32 %v313_v19, %v274_v25 }
 0x318   :  { %v290_v27 = vadd.f32 %v314_v21, %v282_v26 }
 0x31a   :  { %292 = vst.msk [vmem:[#allocation2 + $0x8] sm:$0xff] %vm40_vm0, %v290_v27 }
 0x31b   :  { %451 = shalt.err (!%p448_p4)
}
 0x31c   :  { %s452_s27 = scalar_lea.hbm %s616_s7, 256 }
 0x31d   :  { %p453_p5 = scmp.ne.s32.totalorder %s616_s7, %s452_s27  ;;  %p456_p6 = scmp.lt.u32.totalorder %s452_s27, %s616_s7 }
 0x31f   :  { %p458_p7 = pnand %p456_p6, %p453_p5 }
 0x321   :  { %461 = shalt.err (!%p458_p7)
}
 0x322   :  { %s465_s8 = smov 128   ;;  %s466_s9 = smov 8  }
 0x323   :  { %304 = dma.vmem_to_hbm [thread:$0]  %s299_s25, 256, %s616_s7, [#allocation3], %s465_s8, %s465_s8, %s466_s9  }
 0x324   :  { %462 = dma.done.wait [#allocation3], 256  }
 0x325   :  { %463 = vsyncadd [#allocation3], 4294967040 }
 0x326   :  { %308 = vsyncpa [#allocation3], 1 }

</bundles_post_ra>
